<compile_context>
chip_gen: v6e
topology: v6e:2x2x1
jax: 0.10.0
libtpu: 0.0.40
codegen_flags: <defaults>
</compile_context>

<pallas_src>
import jax
import jax.numpy as jnp
import numpy as np
from jax import lax
from jax.experimental import pallas as pl
from jax.experimental.pallas import tpu as pltpu


# ---------------------------------------------------------------------------
# Kernel body
# ---------------------------------------------------------------------------
def _make_self_attn_kernel(with_attn, mxu_dtype, approx_recip):
    cast = (lambda a: a.astype(mxu_dtype)) if mxu_dtype is not None else (lambda a: a)

    def kernel(x_q_ref, k_ref, v_ref, wq_t_ref, bq_ref, gamma_ref, *out_refs):
        if with_attn:
            out_ref, attn_ref = out_refs
        else:
            (out_ref,) = out_refs
            attn_ref = None

        x_q = x_q_ref[...]                                          # (C, TQ)

        # Q projection for this query tile: (C8p, C) @ (C, TQ) -> (C8p, TQ).
        q = jnp.dot(wq_t_ref[...], cast(x_q),
                    preferred_element_type=jnp.float32) + bq_ref[...]

        # energy[i, j] = <q[:, i], k[:, j]> — contract the channel axis of
        # both operands; only the small (C8p, TQ) q tile ever needs re-layout,
        # never the (C8p, N) K slab.
        energy = lax.dot_general(cast(q), k_ref[...],
                                 (((0,), (0,)), ((), ())),
                                 preferred_element_type=jnp.float32)  # (TQ, N)

        # Row softmax, f32 throughout.  approx reciprocal -> EUP slot.
        m = jnp.max(energy, axis=-1, keepdims=True)
        e = jnp.exp(energy - m)
        denom = jnp.sum(e, axis=-1, keepdims=True)
        attn = e * pl.reciprocal(denom, approx=approx_recip)          # (TQ, N)

        if with_attn:
            attn_ref[...] = attn.astype(attn_ref.dtype)

        # out[c, i] = sum_j v[c, j] * attn[i, j]  (trans-B matmul on the MXU;
        # note: K of the energy matmul is only C//8, so the kernel is usually
        # exp/VPU/store bound rather than MXU bound).
        out = lax.dot_general(v_ref[...], cast(attn),
                              (((1,), (1,)), ((), ())),
                              preferred_element_type=jnp.float32)     # (C, TQ)

        # gamma * out + residual, stored lane-dense as (C, TQ).
        out_ref[...] = (gamma_ref[0, 0] * out
                        + x_q.astype(jnp.float32)).astype(out_ref.dtype)

    return kernel


# ---------------------------------------------------------------------------
# Resource sizing helpers
# ---------------------------------------------------------------------------
def _physical_vmem_bytes():
    try:
        return int(pltpu.get_tpu_info().vmem_capacity_bytes)
    except Exception:
        return 64 * 1024 * 1024          # conservative: v7x per-TensorCore


def _step_vmem_bytes(C, c8p, N, tq, x_isz, kv_isz, out_isz, attn_isz, with_attn):
    """Rough per-step VMEM footprint: double-buffered pipeline blocks plus
    live f32 intermediates (energy / exp / attn rows, q, PV result)."""
    b = 0
    b += 2 * C * tq * x_isz                      # x q-tile blocks
    b += 2 * c8p * N * kv_isz                    # K blocks (resident per batch)
    b += 2 * C * N * kv_isz                      # V blocks (resident per batch)
    b += 2 * (c8p * C * kv_isz + c8p * 4)        # wq^T + bq (tiny, constant)
    b += 2 * C * tq * out_isz                    # out blocks
    if with_attn:
        b += 2 * tq * N * attn_isz               # attention-map blocks
    b += 4 * tq * N * 4                          # energy / exp / attn live f32
    b += (2 * c8p * tq + 2 * C * tq) * 4         # q, PV result
    return b


def _choose_tq(N, footprint_fn, phys_vmem):
    """Largest 128-aligned query tile whose footprint fits comfortably."""
    if N % 128 != 0:
        return N                                 # tiny feature maps: one tile
    for cand in (512, 256, 128):                 # v6e/v5e reach 512; v7x 128/256
        if N % cand == 0 and footprint_fn(cand) <= 0.55 * phys_vmem:
            return cand
    return 128


# ---------------------------------------------------------------------------
# Wrapper
# ---------------------------------------------------------------------------
def self_attn_pallas(x, wq, wk, wv, bq, bk, bv, gamma, *,
                     return_attention=True, tq=None,
                     mxu_dtype=jnp.bfloat16, attn_dtype=jnp.float32,
                     approx_recip=None):
    """SAGAN self-attention forward.

    x: (B, C, W, H) NCHW.  wq/wk: (C, C//8), wv: (C, C), bq/bk: (1, C//8),
    bv: (1, C), gamma: (1, 1).  Returns (out NCHW, attention (B, N, N) or None).

    mxu_dtype: operand dtype for the MXU matmuls (accumulation is always f32,
      softmax is always f32).  None = exact f32 path.
    """
    B, C, W, H = x.shape
    N = W * H
    C8 = wq.shape[1]
    if approx_recip is None:
        approx_recip = mxu_dtype is not None

    f32 = jnp.float32
    kv_dtype = mxu_dtype if mxu_dtype is not None else f32
    kv_isz = jnp.dtype(kv_dtype).itemsize
    # Pad C//8 up to the sublane tile of the MXU dtype; the zero weight/bias
    # rows contribute exactly zero to the energy (semantics preserving).
    align = 8 * max(1, 4 // kv_isz)
    c8p = -(-C8 // align) * align

    x_cn = x.reshape(B, C, N)                    # free view of NCHW

    prec = lax.Precision.HIGHEST
    wq_pad = jnp.pad(wq.astype(f32), ((0, 0), (0, c8p - C8)))
    wk_pad = jnp.pad(wk.astype(f32), ((0, 0), (0, c8p - C8)))
    bq_pad = jnp.pad(bq.reshape(-1).astype(f32), (0, c8p - C8))
    bk_pad = jnp.pad(bk.reshape(-1).astype(f32), (0, c8p - C8))

    # --- K / V projections: tiny XLA einsums done once per call, stored in
    # the MXU dtype so the kernel never re-casts the big slabs and every
    # (b, q-tile) grid point is independent.
    k_all = (jnp.einsum('cd,bcn->bdn', wk_pad, x_cn, precision=prec)
             + bk_pad.reshape(1, c8p, 1)).astype(kv_dtype)           # (B, C8p, N)
    v_all = (jnp.einsum('cd,bcn->bdn', wv.astype(f32), x_cn, precision=prec)
             + bv.reshape(1, C, 1).astype(f32)).astype(kv_dtype)     # (B, C, N)

    wq_t = wq_pad.T.astype(kv_dtype)                                 # (C8p, C)
    bq_c = bq_pad.reshape(c8p, 1)                                    # f32
    gamma_s = gamma.reshape(1, 1).astype(f32)

    x_isz = jnp.dtype(x.dtype).itemsize
    attn_isz = jnp.dtype(attn_dtype).itemsize
    phys = _physical_vmem_bytes()

    def footprint(tq_):
        return _step_vmem_bytes(C, c8p, N, tq_, x_isz, kv_isz, x_isz,
                                attn_isz, return_attention)

    if tq is None:
        tq = _choose_tq(N, footprint, phys)
    assert N % tq == 0, (N, tq)
    n_tiles = N // tq

    # VMEM budget: generous headroom over the estimate, but capped well below
    # physical so compiler-internal scratch / spills are never starved (do NOT
    # request the whole 64 MiB on v7x).
    vmem_limit = int(min(max(2 * footprint(tq) + (2 << 20), 32 << 20),
                         0.85 * phys))

    out_spec = pl.BlockSpec((None, C, tq), lambda b, t: (b, 0, t))
    if return_attention:
        out_shape = (jax.ShapeDtypeStruct((B, C, N), x.dtype),
                     jax.ShapeDtypeStruct((B, N, N), attn_dtype))
        out_specs = (out_spec,
                     pl.BlockSpec((None, tq, N), lambda b, t: (b, t, 0)))
    else:
        out_shape = jax.ShapeDtypeStruct((B, C, N), x.dtype)
        out_specs = out_spec

    kernel = _make_self_attn_kernel(return_attention, mxu_dtype, approx_recip)

    result = pl.pallas_call(
        kernel,
        out_shape=out_shape,
        grid=(B, n_tiles),
        in_specs=[
            pl.BlockSpec((None, C, tq), lambda b, t: (b, 0, t)),     # x q-tile
            pl.BlockSpec((None, c8p, N), lambda b, t: (b, 0, 0)),    # K (per b)
            pl.BlockSpec((None, C, N), lambda b, t: (b, 0, 0)),      # V (per b)
            pl.BlockSpec((c8p, C), lambda b, t: (0, 0)),             # wq^T
            pl.BlockSpec((c8p, 1), lambda b, t: (0, 0)),             # bq
            pl.BlockSpec(memory_space=pltpu.MemorySpace.SMEM),       # gamma
        ],
        out_specs=out_specs,
        compiler_params=pltpu.CompilerParams(
            # Every (b, q-tile) grid point is independent -> both axes are
            # parallel, so v7x's two TensorCores get work even at B == 1.
            dimension_semantics=("parallel", "parallel"),
            vmem_limit_bytes=vmem_limit,
        ),
    )(x_cn, k_all, v_all, wq_t, bq_c, gamma_s)

    if return_attention:
        out_cn, attention = result
    else:
        out_cn, attention = result, None
    return out_cn.reshape(B, C, W, H), attention


# ---------------------------------------------------------------------------
# Pure-JAX reference mirroring the torch forward exactly (full f32)
# ---------------------------------------------------------------------------
def self_attn_reference(x, wq, wk, wv, bq, bk, bv, gamma):
    B, C, W, H = x.shape
    N = W * H
    prec = lax.Precision.HIGHEST
    x_flat = jnp.transpose(x.reshape(B, C, N), (0, 2, 1))            # (B, N, C)
    q = jnp.einsum('bnc,cd->bnd', x_flat, wq, precision=prec) + bq   # (B, N, C8)
    k = jnp.einsum('bnc,cd->bnd', x_flat, wk, precision=prec) + bk
    v = jnp.einsum('bnc,cd->bnd', x_flat, wv, precision=prec) + bv   # (B, N, C)
    energy = jnp.einsum('bid,bjd->bij', q, k, precision=prec)        # (B, N, N)
    attn = jax.nn.softmax(energy, axis=-1)
    out = jnp.einsum('bij,bjc->bic', attn, v, precision=prec)        # (B, N, C)
    out = gamma[0, 0] * out + x_flat
    out = jnp.transpose(out, (0, 2, 1)).reshape(B, C, W, H)
    return out, attn


if __name__ == "__main__":
    # Small shapes consistent with the module: in_dim must be >= 8 for C//8.
    B, C, W, H = 2, 64, 16, 16            # N = 256, C//8 = 8
    C8 = C // 8
    key = jax.random.PRNGKey(0)
    k1, k2, k3, k4, k5, k6, k7 = jax.random.split(key, 7)

    x = jax.random.normal(k1, (B, C, W, H), dtype=jnp.float32)
    # Conv2d 1x1 weights stored as (C_in, C_out).
    wq = jax.random.normal(k2, (C, C8), dtype=jnp.float32) * 0.1
    wk = jax.random.normal(k3, (C, C8), dtype=jnp.float32) * 0.1
    wv = jax.random.normal(k4, (C, C), dtype=jnp.float32) * 0.1
    bq = jax.random.normal(k5, (1, C8), dtype=jnp.float32) * 0.05
    bk = jax.random.normal(k6, (1, C8), dtype=jnp.float32) * 0.05
    bv = jax.random.normal(k7, (1, C), dtype=jnp.float32) * 0.05
    # PyTorch inits gamma to 0; use a nonzero value so the attention branch
    # actually contributes to the checked output.
    gamma = jnp.full((1, 1), 0.5, dtype=jnp.float32)

    out_ref, attn_ref = self_attn_reference(x, wq, wk, wv, bq, bk, bv, gamma)

    # 1) Strict-correctness path: exact f32 MXU operands, exact softmax
    #    reciprocal, multi-tile query axis (TQ=128 < N=256) -> tight tolerances.
    out_f32, attn_f32 = self_attn_pallas(
        x, wq, wk, wv, bq, bk, bv, gamma,
        tq=128, mxu_dtype=None, approx_recip=False)
    out_f32, attn_f32 = jax.block_until_ready((out_f32, attn_f32))
    np.testing.assert_allclose(np.asarray(out_f32), np.asarray(out_ref),
                               rtol=1e-4, atol=1e-4)
    np.testing.assert_allclose(np.asarray(attn_f32), np.asarray(attn_ref),
                               rtol=1e-4, atol=1e-5)

    # 2) Performance defaults: bf16 MXU operands (f32 accumulation, padded
    #    C//8), approx softmax reciprocal, hardware-derived TQ / VMEM budget.
    out_bf, attn_bf = self_attn_pallas(x, wq, wk, wv, bq, bk, bv, gamma)
    out_bf, attn_bf = jax.block_until_ready((out_bf, attn_bf))
    np.testing.assert_allclose(np.asarray(out_bf), np.asarray(out_ref),
                               rtol=5e-2, atol=5e-2)
    np.testing.assert_allclose(np.asarray(attn_bf), np.asarray(attn_ref),
                               rtol=5e-2, atol=1e-2)

    # 3) Fast path: skip the (B, N, N) attention writeback entirely (dominant
    #    HBM traffic at realistic SAGAN sizes).
    out_fast, none_attn = self_attn_pallas(x, wq, wk, wv, bq, bk, bv, gamma,
                                           return_attention=False)
    out_fast = jax.block_until_ready(out_fast)
    assert none_attn is None
    np.testing.assert_allclose(np.asarray(out_fast), np.asarray(out_ref),
                               rtol=5e-2, atol=5e-2)

    print("KERNEL_OK")
</pallas_src>

<mosaic_0001>
module attributes {stable_mosaic.version = 11 : i64} {
  func.func @kernel(%arg0: i32, %arg1: i32, %arg2: memref<1x64x128xf32, #tpu.memory_space<vmem>>, %arg3: memref<1x8x256xf32, #tpu.memory_space<vmem>>, %arg4: memref<1x64x256xf32, #tpu.memory_space<vmem>>, %arg5: memref<8x64xf32, #tpu.memory_space<vmem>>, %arg6: memref<8x1xf32, #tpu.memory_space<vmem>>, %arg7: memref<1x1xf32, #tpu.memory_space<smem>>, %arg8: memref<1x64x128xf32, #tpu.memory_space<vmem>>, %arg9: memref<1x128x256xf32, #tpu.memory_space<vmem>>) attributes {dimension_semantics = [#tpu.dimension_semantics<parallel>, #tpu.dimension_semantics<parallel>], iteration_bounds = array<i64: 2, 2>, scalar_prefetch = 0 : i64, scratch_operands = 0 : i64, tpu.core_type = #tpu.core_type<tc>, window_params = [{transform_indices = @transform_0, window_bounds = array<i64: 1, 64, 128>}, {transform_indices = @transform_1, window_bounds = array<i64: 1, 8, 256>}, {transform_indices = @transform_2, window_bounds = array<i64: 1, 64, 256>}, {pipeline_mode = #tpu.pipeline_mode<synchronous>, transform_indices = @transform_3, window_bounds = array<i64: 8, 64>}, {pipeline_mode = #tpu.pipeline_mode<synchronous>, transform_indices = @transform_4, window_bounds = array<i64: 8, 1>}, {transform_indices = @transform_5, window_bounds = array<i64: 1, 1>}, {transform_indices = @transform_6, window_bounds = array<i64: 1, 64, 128>}, {transform_indices = @transform_7, window_bounds = array<i64: 1, 128, 256>}]} {
    %c0 = arith.constant 0 : index
    %c0_0 = arith.constant 0 : index
    %c0_1 = arith.constant 0 : index
    %0 = vector.load %arg2[%c0, %c0_0, %c0_1] : memref<1x64x128xf32, #tpu.memory_space<vmem>>, vector<1x64x128xf32>
    %1 = vector.shape_cast %0 : vector<1x64x128xf32> to vector<64x128xf32>
    %c0_2 = arith.constant 0 : index
    %c0_3 = arith.constant 0 : index
    %2 = vector.load %arg5[%c0_2, %c0_3] : memref<8x64xf32, #tpu.memory_space<vmem>>, vector<8x64xf32>
    %cst = arith.constant dense<0.000000e+00> : vector<8x128xf32>
    %3 = tpu.matmul %2, %1, %cst {dimension_numbers = #tpu.dot_dimension_numbers<[1], [0], [0], [1], [0, 0, 1, 1], [], []>} : vector<8x64xf32>, vector<64x128xf32>, vector<8x128xf32> -> vector<8x128xf32>
    %c0_4 = arith.constant 0 : index
    %c0_5 = arith.constant 0 : index
    %4 = vector.load %arg6[%c0_4, %c0_5] : memref<8x1xf32, #tpu.memory_space<vmem>>, vector<8x1xf32>
    %5 = vector.broadcast %4 : vector<8x1xf32> to vector<8x128xf32>
    %6 = arith.addf %3, %5 : vector<8x128xf32>
    %c0_6 = arith.constant 0 : index
    %c0_7 = arith.constant 0 : index
    %c0_8 = arith.constant 0 : index
    %7 = vector.load %arg3[%c0_6, %c0_7, %c0_8] : memref<1x8x256xf32, #tpu.memory_space<vmem>>, vector<1x8x256xf32>
    %8 = vector.shape_cast %7 : vector<1x8x256xf32> to vector<8x256xf32>
    %cst_9 = arith.constant dense<0.000000e+00> : vector<128x256xf32>
    %9 = tpu.matmul %6, %8, %cst_9 {dimension_numbers = #tpu.dot_dimension_numbers<[0], [0], [1], [1], [0, 1, 1, 1], [], []>} : vector<8x128xf32>, vector<8x256xf32>, vector<128x256xf32> -> vector<128x256xf32>
    %cst_10 = arith.constant dense<0xFF800000> : vector<128xf32>
    %10 = vector.multi_reduction <maximumf>, %9, %cst_10 [1] : vector<128x256xf32> to vector<128xf32>
    %11 = vector.shape_cast %10 : vector<128xf32> to vector<128x1xf32>
    %12 = vector.broadcast %11 : vector<128x1xf32> to vector<128x256xf32>
    %13 = arith.subf %9, %12 : vector<128x256xf32>
    %14 = math.exp %13 : vector<128x256xf32>
    %cst_11 = arith.constant dense<0.000000e+00> : vector<128xf32>
    %15 = vector.multi_reduction <add>, %14, %cst_11 [1] : vector<128x256xf32> to vector<128xf32>
    %16 = vector.shape_cast %15 : vector<128xf32> to vector<128x1xf32>
    %17 = tpu.reciprocal %16 : vector<128x1xf32> -> vector<128x1xf32>
    %18 = vector.broadcast %17 : vector<128x1xf32> to vector<128x256xf32>
    %19 = arith.mulf %14, %18 : vector<128x256xf32>
    %c0_12 = arith.constant 0 : index
    %c0_13 = arith.constant 0 : index
    %c0_14 = arith.constant 0 : index
    %20 = vector.load %arg9[%c0_12, %c0_13, %c0_14] : memref<1x128x256xf32, #tpu.memory_space<vmem>>, vector<1x128x256xf32>
    %21 = vector.shape_cast %20 : vector<1x128x256xf32> to vector<128x256xf32>
    %22 = vector.shape_cast %19 : vector<128x256xf32> to vector<1x128x256xf32>
    tpu.vector_store %arg9[%c0_12, %c0_13, %c0_14], %22 {strides = array<i32>} : memref<1x128x256xf32, #tpu.memory_space<vmem>>, vector<1x128x256xf32>,
    %c0_15 = arith.constant 0 : index
    %c0_16 = arith.constant 0 : index
    %c0_17 = arith.constant 0 : index
    %23 = vector.load %arg4[%c0_15, %c0_16, %c0_17] : memref<1x64x256xf32, #tpu.memory_space<vmem>>, vector<1x64x256xf32>
    %24 = vector.shape_cast %23 : vector<1x64x256xf32> to vector<64x256xf32>
    %cst_18 = arith.constant dense<0.000000e+00> : vector<64x128xf32>
    %25 = tpu.matmul %24, %19, %cst_18 {dimension_numbers = #tpu.dot_dimension_numbers<[1], [1], [0], [0], [0, 0, 1, 0], [], []>} : vector<64x256xf32>, vector<128x256xf32>, vector<64x128xf32> -> vector<64x128xf32>
    %c0_19 = arith.constant 0 : index
    %c0_20 = arith.constant 0 : index
    %26 = memref.load %arg7[%c0_19, %c0_20] : memref<1x1xf32, #tpu.memory_space<smem>>
    %27 = vector.broadcast %26 : f32 to vector<64x128xf32>
    %28 = arith.mulf %27, %25 : vector<64x128xf32>
    %29 = arith.addf %28, %1 : vector<64x128xf32>
    %c0_21 = arith.constant 0 : index
    %c0_22 = arith.constant 0 : index
    %c0_23 = arith.constant 0 : index
    %30 = vector.load %arg8[%c0_21, %c0_22, %c0_23] : memref<1x64x128xf32, #tpu.memory_space<vmem>>, vector<1x64x128xf32>
    %31 = vector.shape_cast %30 : vector<1x64x128xf32> to vector<64x128xf32>
    %32 = vector.shape_cast %29 : vector<64x128xf32> to vector<1x64x128xf32>
    tpu.vector_store %arg8[%c0_21, %c0_22, %c0_23], %32 {strides = array<i32>} : memref<1x64x128xf32, #tpu.memory_space<vmem>>, vector<1x64x128xf32>,
    return
  }
  func.func @transform_0(%arg0: i32, %arg1: i32) -> (i32, i32, i32) {
    %c0_i32 = arith.constant 0 : i32
    %c0_i32_0 = arith.constant 0 : i32
    return %arg0, %c0_i32, %arg1 : i32, i32, i32
  }
  func.func @transform_1(%arg0: i32, %arg1: i32) -> (i32, i32, i32) {
    %c0_i32 = arith.constant 0 : i32
    %c0_i32_0 = arith.constant 0 : i32
    %c0_i32_1 = arith.constant 0 : i32
    return %arg0, %c0_i32, %c0_i32_0 : i32, i32, i32
  }
  func.func @transform_2(%arg0: i32, %arg1: i32) -> (i32, i32, i32) {
    %c0_i32 = arith.constant 0 : i32
    %c0_i32_0 = arith.constant 0 : i32
    %c0_i32_1 = arith.constant 0 : i32
    return %arg0, %c0_i32, %c0_i32_0 : i32, i32, i32
  }
  func.func @transform_3(%arg0: i32, %arg1: i32) -> (i32, i32) {
    %c0_i32 = arith.constant 0 : i32
    %c0_i32_0 = arith.constant 0 : i32
    %c0_i32_1 = arith.constant 0 : i32
    return %c0_i32, %c0_i32_0 : i32, i32
  }
  func.func @transform_4(%arg0: i32, %arg1: i32) -> (i32, i32) {
    %c0_i32 = arith.constant 0 : i32
    %c0_i32_0 = arith.constant 0 : i32
    %c0_i32_1 = arith.constant 0 : i32
    return %c0_i32, %c0_i32_0 : i32, i32
  }
  func.func @transform_5(%arg0: i32, %arg1: i32) -> (i32, i32) {
    %c0_i32 = arith.constant 0 : i32
    %c0_i32_0 = arith.constant 0 : i32
    %c0_i32_1 = arith.constant 0 : i32
    return %c0_i32, %c0_i32_0 : i32, i32
  }
  func.func @transform_6(%arg0: i32, %arg1: i32) -> (i32, i32, i32) {
    %c0_i32 = arith.constant 0 : i32
    %c0_i32_0 = arith.constant 0 : i32
    return %arg0, %c0_i32, %arg1 : i32, i32, i32
  }
  func.func @transform_7(%arg0: i32, %arg1: i32) -> (i32, i32, i32) {
    %c0_i32 = arith.constant 0 : i32
    %c0_i32_0 = arith.constant 0 : i32
    return %arg0, %arg1, %c0_i32 : i32, i32, i32
  }
}

</mosaic_0001>

<bundles_post_ra>
// kernel: tpu_custom_call.1
= control target key start
LH: loop header
LB: loop body
LE: loop exit
PB: predicated region body
PF: predicated region fallthrough
CT: control target
= control target key end

     0   :  { %s2686_s0 = inlined_call_operand.hbm [shape: f32[2,64,256], index: 0, kind: input, shape index: {}]   ;;  %s2687_s1 = inlined_call_operand.hbm [shape: f32[2,8,256], index: 1, kind: input, shape index: {}]   ;;  %s2688_s2 = inlined_call_operand.hbm [shape: f32[2,64,256], index: 2, kind: input, shape index: {}]   ;;  %s2689_s3 = inlined_call_operand.vmem [shape: f32[8,64], index: 3, kind: input, shape index: {}]   ;;  %s2690_s4 = inlined_call_operand.vmem [shape: f32[8,1], index: 4, kind: input, shape index: {}]   ;;  %s2691_s5 = inlined_call_operand.<no memory space> [shape: f32[1,1], index: 5, kind: input, shape index: {}]   ;;  %s2692_s6 = inlined_call_operand.hbm [shape: f32[2,64,256], index: 6, kind: output, shape index: {0}]   ;;  %s2693_s7 = inlined_call_operand.hbm [shape: f32[2,256,256], index: 7, kind: output, shape index: {1}]  }
   0x1   :  { %2711 = sst [smem:[#allocation28_spill]] %s2687_s1 }
   0x2   :  { %2712 = sst [smem:[#allocation29_spill]] %s2692_s6 }
   0x3   :  { %2713 = sst [smem:[#allocation30_spill]] %s2693_s7 }
   0x4   :  { %13 = sst [smem:[#allocation2]] %s2691_s5 }
   0x5   :  { %14 = vsyncpa [#allocation4], 0 }
   0x6   :  { %16 = vsyncpa [#allocation4 + $0x1], 0 }
   0x7   :  { %17 = vsyncpa [#allocation7], 0 }
   0x8   :  { %19 = vsyncpa [#allocation7 + $0x1], 0 }
   0x9   :  { %20 = vsyncpa [#allocation5], 0 }
   0xa   :  { %22 = vsyncpa [#allocation5 + $0x1], 0 }
   0xb   :  { %23 = vsyncpa [#allocation11], 0 }
   0xc   :  { %25 = vsyncpa [#allocation11 + $0x1], 0  ;;  %s2002_s26 = smov 0   ;;  %s2004_s27 = smov 0  }
   0xd   :  { %s2006_s28 = smov 0   ;;  %s2008_s29 = smov 0  }
   0xe   :  { %s2010_s30 = smov 0   ;;  %s2012_s8 = smov 0  }
   0xf   :  { %s2014_s5 = smov 0   ;;  %s2016_s9 = smov 0  }
  0x10   :  { %s2018_s10 = smov 0   ;;  %s2020_s11 = smov 0  }
  0x11   :  { %s2022_s12 = smov 0  }
  0x12 LB: > { %2714 = sst [smem:[#allocation16_spill]] %s1909_s28  ;;  %s2058_s13 = sadd.s32 4294967295, %s1941_s12   ;;  %s1941_s12 = sphi %s2022_s12, %s31_s12   ;;  %s1937_s11 = sphi %s2020_s11, %s2761_s11   ;;  %s1933_s10 = sphi %s2018_s10, %s2760_s10   ;;  %s1929_s9 = sphi %s2016_s9, %s2759_s9   ;;  %s1925_s5 = sphi %s2014_s5, %s2758_s5   ;;  %s1921_s8 = sphi %s2012_s8, %s2751_s8   ;;  %s1917_s30 = sphi %s2010_s30, %s2757_s30   ;;  %s1913_s29 = sphi %s2008_s29, %s2756_s29   ;;  %s1909_s28 = sphi %s2006_s28, %s2749_s28   ;;  %s1905_s27 = sphi %s2004_s27, %s2755_s27   ;;  %s1901_s26 = sphi %s2002_s26, %s2754_s26  }
  0x13   : > { %2715 = sst [smem:[#allocation17_spill]] %s1913_s29  ;;  %s1362_s14 = sadd.s32 4294967294, %s1941_s12  }
  0x14   : > { %2716 = sst [smem:[#allocation18_spill]] %s1921_s8  ;;  %s40_s15 = sadd.s32 1, %s1933_s10 }
  0x15   : > { %2717 = sst [smem:[#allocation19_spill]] %s1925_s5  ;;  %s43_s16 = sadd.s32 1, %s1937_s11 }
  0x16   : > { %2718 = sst [smem:[#allocation20_spill]] %s1929_s9  ;;  %p41_p0 = scmp.ge.s32.totalorder %s40_s15, 2 }
  0x17   : > { %2719 = sst [smem:[#allocation21_spill]] %s1941_s12  ;;  %s52_s17 = sadd.s32 1, %s1921_s8 }
  0x18   : > { %p59_p1 = scmp.ne.s32.totalorder %s1921_s8, %s1917_s30  ;;  %p60_p2 = scmp.eq.s32.totalorder %s1941_s12, 0 }
  0x19   : > { %s2763_s15 = smov (%p41_p0, %s40_s15), 0  ;;  %s2765_s16 = smov (!%p41_p0, %s43_s16), %s1937_s11 }
  0x1a   : > { %2720 = sst [smem:[#allocation22_spill]] %s2763_s15  ;;  %s48_s18 = ssub.s32 %s1933_s10, %s2763_s15 }
  0x1b   : > { %p2077_p3 = por %p60_p2, %p59_p1  ;;  %p45_p4 = scmp.ge.s32.totalorder %s2765_s16, 2 }
  0x1c   : > { %p2696_p5 = scmp.ne.s32.totalorder %s1917_s30, %s1913_s29  ;;  %p66_p6 = scmp.eq.s32.totalorder %s2058_s13, 0 }
  0x1d   : > { %s78_s20 = sadd.s32 1, %s1909_s28  ;;  %s2767_s16 = smov (%p45_p4, %s2765_s16), 0 }
  0x1e   : > { %2722 = sst [smem:[#allocation23_spill]] %s2767_s16  ;;  %p2092_p7 = por %p66_p6, %p2696_p5 }
  0x1f   : > { %p85_p8 = scmp.ne.s32.totalorder %s1909_s28, %s1905_s27  ;;  %s47_s22 = ssub.s32 %s1937_s11, %s2767_s16 }
  0x20   : > { %s2723_s21 = scalar_select %p2092_p7, 1, 0 }
  0x21   : > { %p91_p9 = scmp.ne.s32.totalorder %s1905_s27, %s1901_s26  ;;  %s49_s23 = sor.u32 %s48_s18, %s47_s22 }
  0x22   : > { %p76_p10 = scmp.eq.s32.totalorder %s47_s22, 0  ;;  %p50_p11 = scmp.eq.s32.totalorder %s49_s23, 0 }
  0x23   : > { %p2104_p12 = por %p85_p8, %p60_p2  ;;  %p2116_p13 = por %p91_p9, %p66_p6 }
  0x24   : > { %s2109_s25 = scalar_select %p76_p10, %s1909_s28, %s78_s20  }
  0x25   : > { %s2112_s15 = scalar_select %p50_p11, %s1921_s8, %s52_s17  }
  0x26   : > { %2725 = sst [smem:[#allocation24_spill]] %s2109_s25  ;;  %p206_p0 = scmp.eq.s32.totalorder %s2058_s13, 3 }
  0x27   : > { %2726 = sst [smem:[#allocation25_spill]] %s2112_s15  ;;  %p212_p4 = scmp.eq.s32.totalorder %s1362_s14, 3 }
  0x28   : > { %p2124_p5 = por %p206_p0, %p59_p1  ;;  %p1497_p2 = scmp.lt.s32.totalorder %s1941_s12, 4 }
  0x29   : > { %p2730_p8 = scmp.ne.s32.totalorder %s1917_s30, %s1913_s29  ;;  %s291_s17 = sand.u32 1, %s1941_s12  }
  0x2a   : > { %s2728_s26 = scalar_select %p2124_p5, 1, 0 }
  0x2b   : > { %p2132_p7 = por %p212_p4, %p2730_p8  ;;  %p2139_p10 = pnand %p1497_p2, %p2077_p3 }
  0x2c   : > { %2729 = sst [smem:[#allocation26_spill]] %s2728_s26  ;;  %s293_s22 = sand.u32 1, %s1909_s28  }
  0x2d   : > { %s2731_s18 = scalar_select %p2132_p7, 1, 0 }
  0x2e   : > { %s1407_s23 = sshll.u32 %s1937_s11, 8  ;;  %s1368_s14 = sshll.u32 %s293_s22, 4 }
  0x2f   : > { %2732 = sst [smem:[#allocation27_spill]] %s2731_s18  ;;  %s295_s7 = scalar_lea.vmem [#allocation6], %s1368_s14 }
  0x30   : > { %s2734_s1 = sld [smem:[#allocation28_spill]]  ;;  %s303_s26 = sshll.u32 %s295_s7, 4  ;;  %s304_s26 = int_to_ptr.vmem [resolvable:$true] %s303_s26 }
  0x31   : > { %p2150_p1 = pnand %p1497_p2, %p2104_p12  ;;  %s1371_s19 = sshll.u32 %s293_s22, 7 }
  0x32   : > { %s2154_s18 = scalar_lea.sflag [#allocation7], %s291_s17  ;;  %s1716_s28 = scalar_lea.vmem %s304_s26, 256 }
  0x33   : > { %p2710_p3 = pneg %p2150_p1  ;;  %p1717_p6 = scmp.ne.s32.totalorder %s304_s26, %s1716_s28 }
  0x34   : > { %s1943_s7 = smov [#allocation6]  }
  0x35   : > { %p1719_p9 = pnand %p1717_p6, %p2710_p3  ;;  %s1721_s15 = sshll.u32 %s1943_s7, 4  ;;  %s1722_s15 = int_to_ptr.vmem [resolvable:$false] %s1721_s15 }
  0x36   : > { %s301_s25 = scalar_lea.hbm %s2734_s1, %s1407_s23  ;;  %s1723_s16 = scalar_lea.vmem %s1722_s15, 512 }
  0x37   : > { %p1720_p11 = pneg %p1719_p9  ;;  %p1724_p12 = scmp.lt.s32.totalorder %s304_s26, %s1722_s15 }
  0x38   : > { %p1725_p0 = scmp.lt.s32.totalorder %s1723_s16, %s1716_s28 }
  0x3a   : > { %p1726_p4 = por %p1725_p0, %p1724_p12 }
  0x3c   : > { %p1727_p2 = pnand %p1726_p4, %p1720_p11 }
  0x3e   : > { %1730 = shalt.err (!%p1727_p2)
}
  0x3f   : > { %1486 = dma.hbm_to_vmem [thread:$0]  (!%p2150_p1), %s301_s25, 256, %s304_s26, %s2154_s18  }
  0x40   : > { %s314_s24 = scalar_lea.vmem [#allocation8], %s1371_s19  ;;  %p1374_p8 = scmp.ge.s32.totalorder %s1941_s12, 1 }
  0x41   : > { %s321_s17 = sshll.u32 %s314_s24, 4  ;;  %p329_p6 = scmp.lt.s32.totalorder %s1941_s12, 5  ;;  %s2165_s17 = int_to_ptr.vmem [resolvable:$true] %s321_s17 }
  0x42   : > { %s269_s22 = sand.u32 1, %s1921_s8   ;;  %s1366_s14 = sshll.u32 %s1937_s11, 4 }
  0x43   : > { %p2168_p9 = pnand %p1374_p8, %p329_p6  ;;  %s1365_s23 = sshll.u32 %s269_s22, 6 }
  0x44   : > { %s278_s7 = sadd.s32 %s1933_s10, %s1366_s14  ;;  %s273_s15 = scalar_lea.vmem [#allocation3], %s1365_s23 }
  0x45   : > { %s281_s16 = sshll.u32 %s273_s15, 4  ;;  %s1367_s1 = sshll.u32 %s278_s7, 7  ;;  %s282_s16 = int_to_ptr.vmem [resolvable:$true] %s281_s16 }
  0x46   : > { %s280_s19 = scalar_lea.hbm %s2686_s0, %s1367_s1  ;;  %s270_s24 = scalar_lea.sflag [#allocation4], %s269_s22 }
  0x47   : > { %p1733_p11 = pneg %p2139_p10  ;;  %s1744_s12 = scalar_lea.vmem %s282_s16, 1024 }
  0x48   : > { %p1745_p12 = scmp.ne.s32.totalorder %s282_s16, %s1744_s12  ;;  %s1944_s9 = smov [#allocation3]  }
  0x49   : > { %s1749_s8 = sshll.u32 %s1944_s9, 4  ;;  %s1750_s8 = int_to_ptr.vmem [resolvable:$false] %s1749_s8 }
  0x4a   : > { %p1747_p0 = pnand %p1745_p12, %p1733_p11  ;;  %s1751_s5 = scalar_lea.vmem %s1750_s8, 2048 }
  0x4b   : > { %p1752_p2 = scmp.lt.s32.totalorder %s282_s16, %s1750_s8  ;;  %p1753_p8 = scmp.lt.s32.totalorder %s1751_s5, %s1744_s12 }
  0x4c   : > { %p1748_p4 = pneg %p1747_p0 }
  0x4d   : > { %p1754_p6 = por %p1753_p8, %p1752_p2 }
  0x4f   : > { %p1755_p3 = pnand %p1754_p6, %p1748_p4 }
  0x51   : > { %1758 = shalt.err (!%p1755_p3)
}
  0x52   : > { %s1945_s23 = smov 256   ;;  %s1946_s1 = smov 128  }
  0x53   : > { %s1947_s22 = smov 8   ;;  %s1408_s14 = sshll.u32 %s1937_s11, 11 }
  0x54   : > { %1483 = dma.hbm_to_vmem [thread:$0]  (!%p2139_p10), %s280_s19, 1024, %s282_s16, %s270_s24, %s1945_s23, %s1946_s1, %s1947_s22  }
  0x55   : > { %s320_s8 = scalar_lea.hbm %s2688_s2, %s1408_s14  ;;  %s1772_s5 = scalar_lea.vmem %s2165_s17, 2048 }
  0x56   : > { %p1773_p11 = scmp.ne.s32.totalorder %s2165_s17, %s1772_s5  ;;  %p2737_p3 = pneg %p2150_p1 }
  0x57   : > { %s1948_s12 = smov [#allocation8]  }
  0x58   : > { %p1775_p12 = pnand %p1773_p11, %p2737_p3  ;;  %s1777_s15 = sshll.u32 %s1948_s12, 4  ;;  %s1778_s15 = int_to_ptr.vmem [resolvable:$false] %s1777_s15 }
  0x59   : > { %s1779_s25 = scalar_lea.vmem %s1778_s15, 4096  ;;  %p1780_p4 = scmp.lt.s32.totalorder %s2165_s17, %s1778_s15 }
  0x5a   : > { %p1776_p0 = pneg %p1775_p12  ;;  %p1781_p2 = scmp.lt.s32.totalorder %s1779_s25, %s1772_s5 }
  0x5c   : > { %p1782_p8 = por %p1781_p2, %p1780_p4 }
  0x5e   : > { %p1783_p6 = pnand %p1782_p8, %p1776_p0 }
  0x60   : > { %1786 = shalt.err (!%p1783_p6)
}
  0x61   : > { %s1949_s20 = smov 16   ;;  %333 = sbr.rel (%p2168_p9) target bundleno = 1310 (0x51e), region = 44 }
  0x62   : > { %1489 = dma.hbm_to_vmem [thread:$0]  (!%p2150_p1), %s320_s8, 2048, %s2165_s17, %s2154_s18, %s1945_s23, %s1945_s23, %s1949_s20  }
  0x63   : > { %s2199_s16 = sand.u32 (!%p2168_p9), 1, %s1917_s30   ;;  %p2738_p10 = scmp.ne.s32.totalorder (!%p2168_p9), %s2723_s21, 0 }
  0x64   : > { %s1375_s26 = sshll.u32 (!%p2168_p9), %s2199_s16, 6  ;;  %s336_s19 = scalar_lea.sflag (!%p2168_p9), [#allocation4], %s2199_s16 }
  0x65   : > { %s2205_s24 = scalar_lea.vmem (!%p2168_p9), [#allocation3], %s1375_s26 }
  0x66   : > { %1884 = dma.done.wait (%p2738_p10), %s336_s19, 1024  }
  0x67   : > { %1886 = vsyncadd (%p2738_p10), %s336_s19, 4294966272  ;;  %s344_s29 = sand.u32 1, %s2058_s13   ;;  %s346_s18 = sand.u32 1, %s1905_s27  }
  0x68   : > { %s2215_s17 = sshll.u32 %s346_s18, 4  ;;  %s345_s28 = scalar_lea.sflag [#allocation7], %s344_s29 }
  0x69   : > { %s348_s23 = scalar_lea.vmem [#allocation6], %s2215_s17 }
  0x6a   : > { %1888 = dma.done.wait (%p2116_p13), %s345_s28, 2304  }
  0x6b   : > { %1890 = vsyncadd (%p2116_p13), %s345_s28, 4294964992  ;;  %v1950_v0 = vmov 0.0   ;;  %vm1951_vm0 = vmmov 0   ;;  %v1952_v1 = vmov 0   ;;  %v411_v2 = vld [vmem:[%s2205_s24 + $0x38] sm:$0xff]  ;;  %v410_v3 = vld [vmem:[%s2205_s24 + $0x30] sm:$0xff] }
  0x6c   : > { %1419 = vmatprep.subr.mxu0 %v1950_v0  ;;  %1435 = vmatprep.mubr.msk.f32.mxu0 %vm1951_vm0, %v1950_v0  ;;  %v409_v4 = vld [vmem:[%s2205_s24 + $0x28] sm:$0xff]  ;;  %v413_v5 = vld [vmem:[%s2690_s4] sm:$0xff]  ;;  %v407_v7 = vld [vmem:[%s2205_s24 + $0x18] sm:$0xff]  ;;  %vm419_vm1 = vcmask 523264   ;;  %vm527_vm2 = vcmask 64512   ;;  %s1377_s22 = sshll.u32 %s346_s18, 7 }
  0x6d   : > { %1598 = vset.pattern.permute.xlu0 %v1952_v1  ;;  %640 = vmatprep.mubr.f32.mxu1 %v1950_v0  ;;  %v408_v6 = vld [vmem:[%s2205_s24 + $0x20] sm:$0xff]  ;;  %v406_v8 = vld [vmem:[%s2205_s24 + $0x10] sm:$0xff]  ;;  %v405_v9 = vld [vmem:[%s2205_s24 + $0x8] sm:$0xff]  ;;  %s2475_s14 = scalar_lea.vmem [#allocation8], %s1377_s22  ;;  %s1379_s9 = sshll.u32 %s2199_s16, 8 }
  0x6e   : > { %1420 = vmatpush3.msra.mxu0 %v411_v2  ;;  %416 = vperm.xlu0 %1598, %v413_v5   ;;  %v404_v10 = vld [vmem:[%s2205_s24] sm:$0xff]  ;;  %v494_v12 = vld [vmem:[%s348_s23 + $0x8] sm:$0xff]  ;;  %s2482_s7 = scalar_lea.vmem [#allocation10], %s1379_s9  ;;  %s2739_s8 = sld [smem:[#allocation19_spill]] }
  0x6f   : > { %1421 = vmatprep.subr.mxu0 %v1950_v0  ;;  %v412_v11 = vld [vmem:[%s2689_s3] sm:$0xff]  ;;  %606 = vmatprep.subr.mxu1 %v494_v12  ;;  %s2740_s5 = sld [smem:[#allocation20_spill]]  ;;  %s1195_s29 = sshll.u32 %s2482_s7, 4  ;;  %s2568_s29 = int_to_ptr.vmem [resolvable:$true] %s1195_s29 }
  0x70   : > { %1422 = vmatpush3.msra.mxu0 %v410_v3  ;;  %v493_v13 = vld [vmem:[%s348_s23] sm:$0xff]  ;;  %s2742_s28 = sld [smem:[#allocation30_spill]]  ;;  %s1162_s13 = scalar_lea.sflag [#allocation11], %s2199_s16 }
  0x71   : > { %1423 = vmatprep.subr.mxu0 %v1950_v0  ;;  %607 = vmatpush1.msra.mxu1 %v493_v13  ;;  %s1787_s21 = scalar_lea.vmem %s2568_s29, 4096  ;;  %s1953_s1 = smov [#allocation10]  }
  0x72   : > { %1424 = vmatpush3.msra.mxu0 %v409_v4  ;;  %p1788_p13 = scmp.ne.s32.totalorder %s2568_s29, %s1787_s21  ;;  %s1791_s22 = sshll.u32 %s1953_s1, 4  ;;  %s1792_s22 = int_to_ptr.vmem [resolvable:$false] %s1791_s22 }
  0x73   : > { %1425 = vmatprep.subr.mxu0 %v1950_v0  ;;  %p1794_p11 = scmp.lt.s32.totalorder %s2568_s29, %s1792_s22 }
  0x74   : > { %1426 = vmatpush3.msra.mxu0 %v408_v6  ;;  %s1409_s15 = sshll.u32 %s2739_s8, 5  ;;  %p1789_p1 = pnand %p1788_p13, %p2124_p5 }
  0x75   : > { %1427 = vmatprep.subr.mxu0 %v1950_v0  ;;  %s1403_s25 = sshll.u32 %s2740_s5, 6 }
  0x76   : > { %1428 = vmatpush3.msra.mxu0 %v407_v7  ;;  %s1192_s20 = sadd.s32 %s1409_s15, %s1403_s25  ;;  %s2743_s23 = smov %s2742_s28 }
  0x77   : > { %1429 = vmatprep.subr.mxu0 %v1950_v0  ;;  %s1404_s19 = sshll.u32 %s1192_s20, 7  ;;  %p1790_p9 = pneg %p1789_p1 }
  0x78   : > { %1430 = vmatpush3.msra.mxu0 %v406_v8  ;;  %s2566_s6 = scalar_lea.hbm %s2742_s28, %s1404_s19 }
  0x79   : > { %1431 = vmatprep.subr.mxu0 %v1950_v0 }
  0x7a   : > { %1432 = vmatpush3.msra.mxu0 %v405_v9 }
  0x7b   : > { %1433 = vmatprep.subr.mxu0 %v1950_v0 }
  0x7c   : > { %1434 = vmatpush3.msra.mxu0 %v404_v10 }
  0x7d   : > { %1436 = vmatmul.mubr.msk.f32.vlgmr.msra.gmra.mxu0 %vm419_vm1, %v412_v11 }
  0xe9   : > { %v417_v14 = vpop.permute.xlu0 %416 }
 0x13d   : > { %v489_v15 = vpop.f32.mrf.mxu0 }
 0x13e   : > { %v490_v16 = vadd.f32 %v489_v15, %v417_v14 }
 0x13f   : > { %v1437_v17 = vpop.f32.mrf.mxu0 }
 0x140   : > { %495 = vxpose.xlu0.b32.start.end [1/1] (short) %v490_v16, 128 }
 0x1bc   : > { %v511_v18 = vpop.trf.xlu0 }
 0x1bd   : > { %1381 = vmatmul.mubr.msk.f32.vlgmr.msra.gmra.mxu1 %vm527_vm2, %v511_v18 }
 0x1be   : > { %646 = vmatprep.mubr.f32.mxu1 %v1950_v0 }
 0x1c0   : > { %v512_v19 = vpop.trf.xlu0 }
 0x1c1   : > { %1382 = vmatmul.mubr.msk.f32.gmra.mxu1 %vm527_vm2, %v512_v19 }
 0x1c2   : > { %652 = vmatprep.mubr.f32.mxu1 %v1950_v0 }
 0x1c4   : > { %v513_v20 = vpop.trf.xlu0 }
 0x1c5   : > { %1383 = vmatmul.mubr.msk.f32.gmra.mxu1 %vm527_vm2, %v513_v20 }
 0x1c6   : > { %658 = vmatprep.mubr.f32.mxu1 %v1950_v0 }
 0x1c8   : > { %v514_v21 = vpop.trf.xlu0 }
 0x1c9   : > { %1384 = vmatmul.mubr.msk.f32.gmra.mxu1 %vm527_vm2, %v514_v21 }
 0x1ca   : > { %664 = vmatprep.mubr.f32.mxu1 %v1950_v0 }
 0x1cc   : > { %v515_v22 = vpop.trf.xlu0 }
 0x1cd   : > { %1385 = vmatmul.mubr.msk.f32.gmra.mxu1 %vm527_vm2, %v515_v22 }
 0x1ce   : > { %670 = vmatprep.mubr.f32.mxu1 %v1950_v0 }
 0x1d0   : > { %v516_v23 = vpop.trf.xlu0 }
 0x1d1   : > { %1386 = vmatmul.mubr.msk.f32.gmra.mxu1 %vm527_vm2, %v516_v23 }
 0x1d2   : > { %676 = vmatprep.mubr.f32.mxu1 %v1950_v0 }
 0x1d4   : > { %v517_v24 = vpop.trf.xlu0 }
 0x1d5   : > { %1387 = vmatmul.mubr.msk.f32.gmra.mxu1 %vm527_vm2, %v517_v24 }
 0x1d6   : > { %682 = vmatprep.mubr.f32.mxu1 %v1950_v0 }
 0x1d8   : > { %v518_v25 = vpop.trf.xlu0 }
 0x1d9   : > { %1388 = vmatmul.mubr.msk.f32.gmra.mxu1 %vm527_vm2, %v518_v25 }
 0x1da   : > { %688 = vmatprep.mubr.f32.mxu1 %v1950_v0 }
 0x1dc   : > { %v519_v26 = vpop.trf.xlu0 }
 0x1dd   : > { %1389 = vmatmul.mubr.msk.f32.gmra.mxu1 %vm527_vm2, %v519_v26 }
 0x1de   : > { %694 = vmatprep.mubr.f32.mxu1 %v1950_v0 }
 0x1e0   : > { %v520_v27 = vpop.trf.xlu0 }
 0x1e1   : > { %1390 = vmatmul.mubr.msk.f32.gmra.mxu1 %vm527_vm2, %v520_v27 }
 0x1e2   : > { %700 = vmatprep.mubr.f32.mxu1 %v1950_v0 }
 0x1e4   : > { %v521_v28 = vpop.trf.xlu0 }
 0x1e5   : > { %1391 = vmatmul.mubr.msk.f32.gmra.mxu1 %vm527_vm2, %v521_v28 }
 0x1e6   : > { %706 = vmatprep.mubr.f32.mxu1 %v1950_v0 }
 0x1e8   : > { %v522_v29 = vpop.trf.xlu0 }
 0x1e9   : > { %1392 = vmatmul.mubr.msk.f32.gmra.mxu1 %vm527_vm2, %v522_v29 }
 0x1ea   : > { %712 = vmatprep.mubr.f32.mxu1 %v1950_v0 }
 0x1ec   : > { %v523_v30 = vpop.trf.xlu0 }
 0x1ed   : > { %1393 = vmatmul.mubr.msk.f32.gmra.mxu1 %vm527_vm2, %v523_v30 }
 0x1ee   : > { %718 = vmatprep.mubr.f32.mxu1 %v1950_v0 }
 0x1f0   : > { %v524_v31 = vpop.trf.xlu0 }
 0x1f1   : > { %1394 = vmatmul.mubr.msk.f32.gmra.mxu1 %vm527_vm2, %v524_v31 }
 0x1f2   : > { %724 = vmatprep.mubr.f32.mxu1 %v1950_v0 }
 0x1f4   : > { %v525_v32 = vpop.trf.xlu0 }
 0x1f5   : > { %1395 = vmatmul.mubr.msk.f32.gmra.mxu1 %vm527_vm2, %v525_v32 }
 0x1f6   : > { %730 = vmatprep.mubr.f32.mxu1 %v1950_v0 }
 0x1f8   : > { %v526_v33 = vpop.trf.xlu0 }
 0x1f9   : > { %1396 = vmatmul.mubr.msk.f32.gmra.mxu1 %vm527_vm2, %v526_v33 }
 0x27d   : > { %v2281_v34 = vpop.f32.mrf.mxu1 }
 0x27f   : > { %v2283_v35 = vpop.f32.mrf.mxu1 }
 0x280   : > { %v737_v17 = vmax.f32 %v2281_v34, %v2283_v35 }
 0x281   : > { %v2285_v36 = vpop.f32.mrf.mxu1 }
 0x283   : > { %v2287_v37 = vpop.f32.mrf.mxu1 }
 0x284   : > { %v740_v16 = vmax.f32 %v2285_v36, %v2287_v37 }
 0x285   : > { %v2289_v38 = vpop.f32.mrf.mxu1 }
 0x287   : > { %v2291_v39 = vpop.f32.mrf.mxu1 }
 0x288   : > { %v743_v15 = vmax.f32 %v2289_v38, %v2291_v39 }
 0x289   : > { %v2293_v40 = vpop.f32.mrf.mxu1 }
 0x28b   : > { %v2295_v41 = vpop.f32.mrf.mxu1 }
 0x28c   : > { %v746_v14 = vmax.f32 %v2293_v40, %v2295_v41 }
 0x28d   : > { %v2297_v42 = vpop.f32.mrf.mxu1 }
 0x28f   : > { %v2299_v43 = vpop.f32.mrf.mxu1 }
 0x290   : > { %v749_v13 = vmax.f32 %v2297_v42, %v2299_v43 }
 0x291   : > { %v2301_v44 = vpop.f32.mrf.mxu1 }
 0x293   : > { %v2303_v45 = vpop.f32.mrf.mxu1 }
 0x294   : > { %v752_v12 = vmax.f32 %v2301_v44, %v2303_v45 }
 0x295   : > { %v2305_v46 = vpop.f32.mrf.mxu1 }
 0x297   : > { %v2307_v47 = vpop.f32.mrf.mxu1 }
 0x298   : > { %v755_v48 = vmax.f32 %v2305_v46, %v2307_v47 }
 0x299   : > { %v2311_v49 = vpop.f32.mrf.mxu1 }
 0x29a   : > { %756 = vmax.xlane.f32.xlu0 %v755_v48 }
 0x29b   : > { %v2313_v50 = vpop.f32.mrf.mxu1 }
 0x29c   : > { %v758_v11 = vmax.f32 %v2311_v49, %v2313_v50 }
 0x29d   : > { %v2315_v51 = vpop.f32.mrf.mxu1 }
 0x29f   : > { %v2317_v52 = vpop.f32.mrf.mxu1 }
 0x2a0   : > { %v761_v10 = vmax.f32 %v2315_v51, %v2317_v52 }
 0x2a1   : > { %v2319_v53 = vpop.f32.mrf.mxu1 }
 0x2a3   : > { %v2321_v54 = vpop.f32.mrf.mxu1 }
 0x2a4   : > { %v764_v9 = vmax.f32 %v2319_v53, %v2321_v54 }
 0x2a5   : > { %v2323_v55 = vpop.f32.mrf.mxu1 }
 0x2a7   : > { %v2325_v56 = vpop.f32.mrf.mxu1 }
 0x2a8   : > { %v767_v8 = vmax.f32 %v2323_v55, %v2325_v56 }
 0x2a9   : > { %v2327_v57 = vpop.f32.mrf.mxu1 }
 0x2ab   : > { %v2329_v58 = vpop.f32.mrf.mxu1 }
 0x2ac   : > { %v770_v7 = vmax.f32 %v2327_v57, %v2329_v58 }
 0x2ad   : > { %v714_v59 = vpop.f32.mrf.mxu1 }
 0x2af   : > { %v716_v60 = vpop.f32.mrf.mxu1 }
 0x2b0   : > { %v773_v6 = vmax.f32 %v714_v59, %v716_v60 }
 0x2b1   : > { %v720_v61 = vpop.f32.mrf.mxu1 }
 0x2b3   : > { %v722_v62 = vpop.f32.mrf.mxu1 }
 0x2b4   : > { %v776_v5 = vmax.f32 %v720_v61, %v722_v62 }
 0x2b5   : > { %v726_v63 = vpop.f32.mrf.mxu1 }
 0x2b7   : > { %v728_v0 = vpop.f32.mrf.mxu1 }
 0x2b8   : > { %v779_v4 = vmax.f32 %v726_v63, %v728_v0 }
 0x2b9   : > { %v732_v1 = vpop.f32.mrf.mxu1 }
 0x2bb   : > { %v734_v2 = vpop.f32.mrf.mxu1 }
 0x2bc   : > { %v782_v3 = vmax.f32 %v732_v1, %v734_v2 }
 0x2be   : > { %783 = vmax.xlane.f32.xlu1 %v782_v3 }
 0x2c2   : > { %780 = vmax.xlane.f32.xlu1 %v779_v4 }
 0x2c6   : > { %777 = vmax.xlane.f32.xlu1 %v776_v5 }
 0x2ca   : > { %774 = vmax.xlane.f32.xlu1 %v773_v6 }
 0x2ce   : > { %771 = vmax.xlane.f32.xlu1 %v770_v7 }
 0x2d2   : > { %768 = vmax.xlane.f32.xlu1 %v767_v8 }
 0x2d6   : > { %765 = vmax.xlane.f32.xlu1 %v764_v9 }
 0x2da   : > { %762 = vmax.xlane.f32.xlu1 %v761_v10 }
 0x2de   : > { %759 = vmax.xlane.f32.xlu1 %v758_v11 }
 0x2e2   : > { %753 = vmax.xlane.f32.xlu1 %v752_v12 }
 0x2e6   : > { %750 = vmax.xlane.f32.xlu1 %v749_v13 }
 0x2ea   : > { %747 = vmax.xlane.f32.xlu1 %v746_v14 }
 0x2ee   : > { %744 = vmax.xlane.f32.xlu1 %v743_v15 }
 0x2f2   : > { %741 = vmax.xlane.f32.xlu1 %v740_v16 }
 0x2f6   : > { %738 = vmax.xlane.f32.xlu1 %v737_v17 }
 0x323   : > { %v757_v17 = vpop.xlane.xlu0 %756 }
 0x347   : > { %v784_v18 = vpop.xlane.xlu1 %783 }
 0x348   : > { %v815_v19 = vsub.f32 %v732_v1, %v784_v18  ;;  %v816_v20 = vsub.f32 %v734_v2, %v784_v18 }
 0x34a   : > { %v877_v21 = vmul.f32 1.442695, %v815_v19  ;;  %v879_v22 = vmul.f32 1.442695, %v816_v20 }
 0x34b   : > { %v781_v23 = vpop.xlane.xlu1 %780 }
 0x34c   : > { %1599 = vpow2.f32 %v877_v21  ;;  %v813_v24 = vsub.f32 %v726_v63, %v781_v23  ;;  %v814_v25 = vsub.f32 %v728_v0, %v781_v23 }
 0x34d   : > { %1601 = vpow2.f32 %v879_v22  ;;  %v797_v22 = vsub.f32 %v2305_v46, %v757_v17 }
 0x34e   : > { %v873_v26 = vmul.f32 1.442695, %v813_v24  ;;  %v875_v27 = vmul.f32 1.442695, %v814_v25  ;;  %v798_v25 = vsub.f32 %v2307_v47, %v757_v17 }
 0x34f   : > { %v778_v28 = vpop.xlane.xlu1 %777  ;;  %v841_v46 = vmul.f32 1.442695, %v797_v22 }
 0x350   : > { %1603 = vpow2.f32 %v873_v26  ;;  %v811_v29 = vsub.f32 %v720_v61, %v778_v28  ;;  %v812_v30 = vsub.f32 %v722_v62, %v778_v28 }
 0x351   : > { %1605 = vpow2.f32 %v875_v27 }
 0x352   : > { %v869_v31 = vmul.f32 1.442695, %v811_v29  ;;  %v871_v32 = vmul.f32 1.442695, %v812_v30 }
 0x353   : > { %v775_v33 = vpop.xlane.xlu1 %774 }
 0x354   : > { %1607 = vpow2.f32 %v869_v31  ;;  %v809_v48 = vsub.f32 %v714_v59, %v775_v33  ;;  %v810_v1 = vsub.f32 %v716_v60, %v775_v33 }
 0x355   : > { %1609 = vpow2.f32 %v871_v32  ;;  %v843_v32 = vmul.f32 1.442695, %v798_v25 }
 0x356   : > { %v865_v2 = vmul.f32 1.442695, %v809_v48  ;;  %v867_v3 = vmul.f32 1.442695, %v810_v1 }
 0x357   : > { %v772_v4 = vpop.xlane.xlu1 %771 }
 0x358   : > { %1611 = vpow2.f32 %v865_v2  ;;  %v807_v63 = vsub.f32 %v2327_v57, %v772_v4  ;;  %v808_v0 = vsub.f32 %v2329_v58, %v772_v4 }
 0x359   : > { %v2355_v5 = vpop.eup %1599  ;;  %1613 = vpow2.f32 %v867_v3 }
 0x35a   : > { %v2357_v61 = vpop.eup %1601  ;;  %v861_v62 = vmul.f32 1.442695, %v807_v63  ;;  %v863_v6 = vmul.f32 1.442695, %v808_v0 }
 0x35b   : > { %v769_v7 = vpop.xlane.xlu1 %768  ;;  %v926_v59 = vadd.f32 %v2357_v61, %v2355_v5 }
 0x35c   : > { %1615 = vpow2.f32 %v861_v62  ;;  %v805_v60 = vsub.f32 %v2323_v55, %v769_v7  ;;  %v806_v8 = vsub.f32 %v2325_v56, %v769_v7 }
 0x35d   : > { %v2363_v9 = vpop.eup %1603  ;;  %1617 = vpow2.f32 %v863_v6  ;;  %927 = vadd.xlane.f32.xlu1 %v926_v59 }
 0x35e   : > { %v2365_v57 = vpop.eup %1605  ;;  %v857_v58 = vmul.f32 1.442695, %v805_v60  ;;  %v859_v10 = vmul.f32 1.442695, %v806_v8 }
 0x35f   : > { %v766_v11 = vpop.xlane.xlu1 %765  ;;  %v923_v12 = vadd.f32 %v2365_v57, %v2363_v9 }
 0x360   : > { %1619 = vpow2.f32 %v857_v58  ;;  %v803_v13 = vsub.f32 %v2319_v53, %v766_v11  ;;  %v804_v14 = vsub.f32 %v2321_v54, %v766_v11 }
 0x361   : > { %v2371_v55 = vpop.eup %1607  ;;  %1621 = vpow2.f32 %v859_v10  ;;  %924 = vadd.xlane.f32.xlu1 %v923_v12 }
 0x362   : > { %v2373_v56 = vpop.eup %1609  ;;  %v853_v15 = vmul.f32 1.442695, %v803_v13  ;;  %v855_v16 = vmul.f32 1.442695, %v804_v14 }
 0x363   : > { %v763_v18 = vpop.xlane.xlu1 %762  ;;  %v920_v19 = vadd.f32 %v2373_v56, %v2371_v55 }
 0x364   : > { %1623 = vpow2.f32 %v853_v15  ;;  %v801_v20 = vsub.f32 %v2315_v51, %v763_v18  ;;  %v802_v53 = vsub.f32 %v2317_v52, %v763_v18 }
 0x365   : > { %v2379_v21 = vpop.eup %1611  ;;  %1625 = vpow2.f32 %v855_v16  ;;  %921 = vadd.xlane.f32.xlu1 %v920_v19 }
 0x366   : > { %v2381_v54 = vpop.eup %1613  ;;  %v849_v23 = vmul.f32 1.442695, %v801_v20  ;;  %v851_v24 = vmul.f32 1.442695, %v802_v53 }
 0x367   : > { %v760_v26 = vpop.xlane.xlu1 %759  ;;  %v917_v27 = vadd.f32 %v2381_v54, %v2379_v21 }
 0x368   : > { %1627 = vpow2.f32 %v849_v23  ;;  %v799_v51 = vsub.f32 %v2311_v49, %v760_v26  ;;  %v800_v52 = vsub.f32 %v2313_v50, %v760_v26 }
 0x369   : > { %v2389_v28 = vpop.eup %1615  ;;  %1629 = vpow2.f32 %v851_v24  ;;  %918 = vadd.xlane.f32.xlu1 %v917_v27 }
 0x36a   : > { %v2391_v29 = vpop.eup %1617  ;;  %v845_v30 = vmul.f32 1.442695, %v799_v51  ;;  %v847_v31 = vmul.f32 1.442695, %v800_v52 }
 0x36b   : > { %v754_v47 = vpop.xlane.xlu1 %753  ;;  %v914_v33 = vadd.f32 %v2391_v29, %v2389_v28 }
 0x36c   : > { %1631 = vpow2.f32 %v845_v30  ;;  %v795_v48 = vsub.f32 %v2301_v44, %v754_v47  ;;  %v796_v49 = vsub.f32 %v2303_v45, %v754_v47 }
 0x36d   : > { %v2397_v50 = vpop.eup %1619  ;;  %1633 = vpow2.f32 %v847_v31  ;;  %915 = vadd.xlane.f32.xlu1 %v914_v33 }
 0x36e   : > { %v2399_v1 = vpop.eup %1621  ;;  %1635 = vpow2.f32 %v841_v46  ;;  %v837_v2 = vmul.f32 1.442695, %v795_v48  ;;  %v839_v3 = vmul.f32 1.442695, %v796_v49 }
 0x36f   : > { %1637 = vpow2.f32 %v843_v32  ;;  %v751_v4 = vpop.xlane.xlu1 %750  ;;  %v911_v63 = vadd.f32 %v2399_v1, %v2397_v50 }
 0x370   : > { %v793_v0 = vsub.f32 %v2297_v42, %v751_v4  ;;  %v794_v44 = vsub.f32 %v2299_v43, %v751_v4  ;;  %1639 = vpow2.f32 %v837_v2 }
 0x371   : > { %v2405_v62 = vpop.eup %1623  ;;  %912 = vadd.xlane.f32.xlu1 %v911_v63  ;;  %1641 = vpow2.f32 %v839_v3 }
 0x372   : > { %v2407_v45 = vpop.eup %1625  ;;  %v833_v6 = vmul.f32 1.442695, %v793_v0  ;;  %v835_v7 = vmul.f32 1.442695, %v794_v44 }
 0x373   : > { %v748_v59 = vpop.xlane.xlu1 %747  ;;  %v908_v60 = vadd.f32 %v2407_v45, %v2405_v62 }
 0x374   : > { %v791_v8 = vsub.f32 %v2293_v40, %v748_v59  ;;  %v792_v58 = vsub.f32 %v2295_v41, %v748_v59  ;;  %1643 = vpow2.f32 %v833_v6  ;;  %v1014_v6 = vld [vmem:[%s2475_s14 + $0x28] sm:$0xff] }
 0x375   : > { %v2413_v42 = vpop.eup %1627  ;;  %909 = vadd.xlane.f32.xlu1 %v908_v60  ;;  %1645 = vpow2.f32 %v835_v7  ;;  %1099 = vmatprep.mubr.f32.mxu1 %v1014_v6  ;;  %v1010_v7 = vld [vmem:[%s2475_s14 + $0x8] sm:$0xff] }
 0x376   : > { %v2415_v43 = vpop.eup %1629  ;;  %v829_v10 = vmul.f32 1.442695, %v791_v8  ;;  %v831_v11 = vmul.f32 1.442695, %v792_v58  ;;  %1089 = vmatprep.mubr.f32.mxu0 %v1010_v7 }
 0x377   : > { %v745_v12 = vpop.xlane.xlu1 %744  ;;  %v905_v13 = vadd.f32 %v2415_v43, %v2413_v42 }
 0x378   : > { %v789_v14 = vsub.f32 %v2289_v38, %v745_v12  ;;  %v790_v15 = vsub.f32 %v2291_v39, %v745_v12  ;;  %1647 = vpow2.f32 %v829_v10 }
 0x379   : > { %v2421_v40 = vpop.eup %1631  ;;  %906 = vadd.xlane.f32.xlu1 %v905_v13  ;;  %1649 = vpow2.f32 %v831_v11 }
 0x37a   : > { %v2423_v41 = vpop.eup %1633  ;;  %v825_v16 = vmul.f32 1.442695, %v789_v14  ;;  %v827_v18 = vmul.f32 1.442695, %v790_v15 }
 0x37b   : > { %v2425_v17 = vpop.eup %1635  ;;  %v742_v19 = vpop.xlane.xlu1 %741  ;;  %v902_v20 = vadd.f32 %v2423_v41, %v2421_v40 }
 0x37c   : > { %v2429_v53 = vpop.eup %1637  ;;  %v787_v38 = vsub.f32 %v2285_v36, %v742_v19  ;;  %v788_v39 = vsub.f32 %v2287_v37, %v742_v19  ;;  %1651 = vpow2.f32 %v825_v16 }
 0x37d   : > { %903 = vadd.xlane.f32.xlu1 %v902_v20  ;;  %v2433_v23 = vpop.eup %1639  ;;  %1653 = vpow2.f32 %v827_v18  ;;  %v899_v26 = vadd.f32 %v2429_v53, %v2425_v17 }
 0x37e   : > { %v821_v22 = vmul.f32 1.442695, %v787_v38  ;;  %v823_v24 = vmul.f32 1.442695, %v788_v39  ;;  %v2437_v27 = vpop.eup %1641 }
 0x37f   : > { %v739_v25 = vpop.xlane.xlu1 %738  ;;  %v896_v30 = vadd.f32 %v2437_v27, %v2433_v23 }
 0x380   : > { %v785_v51 = vsub.f32 %v2281_v34, %v739_v25  ;;  %v786_v52 = vsub.f32 %v2283_v35, %v739_v25  ;;  %1655 = vpow2.f32 %v821_v22 }
 0x381   : > { %900 = vadd.xlane.f32.xlu1 %v899_v26  ;;  %v2441_v37 = vpop.eup %1643  ;;  %1657 = vpow2.f32 %v823_v24 }
 0x382   : > { %v817_v36 = vmul.f32 1.442695, %v785_v51  ;;  %v819_v46 = vmul.f32 1.442695, %v786_v52  ;;  %v2445_v31 = vpop.eup %1645 }
 0x383   : > { %v893_v34 = vadd.f32 %v2445_v31, %v2441_v37 }
 0x384   : > { %1659 = vpow2.f32 %v817_v36 }
 0x385   : > { %897 = vadd.xlane.f32.xlu1 %v896_v30  ;;  %v2447_v32 = vpop.eup %1647  ;;  %1661 = vpow2.f32 %v819_v46 }
 0x386   : > { %v2451_v35 = vpop.eup %1649 }
 0x387   : > { %v890_v33 = vadd.f32 %v2451_v35, %v2447_v32 }
 0x389   : > { %894 = vadd.xlane.f32.xlu1 %v893_v34  ;;  %v2453_v47 = vpop.eup %1651 }
 0x38a   : > { %v2457_v48 = vpop.eup %1653 }
 0x38b   : > { %v887_v2 = vadd.f32 %v2457_v48, %v2453_v47 }
 0x38d   : > { %891 = vadd.xlane.f32.xlu1 %v890_v33  ;;  %v2459_v49 = vpop.eup %1655 }
 0x38e   : > { %v2463_v3 = vpop.eup %1657 }
 0x38f   : > { %v884_v63 = vadd.f32 %v2463_v3, %v2459_v49 }
 0x391   : > { %888 = vadd.xlane.f32.xlu1 %v887_v2  ;;  %v2465_v4 = vpop.eup %1659 }
 0x392   : > { %v2469_v0 = vpop.eup %1661 }
 0x393   : > { %v881_v44 = vadd.f32 %v2469_v0, %v2465_v4 }
 0x395   : > { %885 = vadd.xlane.f32.xlu1 %v884_v63 }
 0x399   : > { %882 = vadd.xlane.f32.xlu1 %v881_v44 }
 0x3e6   : > { %v928_v59 = vpop.xlane.xlu1 %927 }
 0x3e7   : > { %1663 = vrcp.f32 %v928_v59 }
 0x3ea   : > { %v925_v60 = vpop.xlane.xlu1 %924 }
 0x3eb   : > { %1665 = vrcp.f32 %v925_v60 }
 0x3ee   : > { %v922_v8 = vpop.xlane.xlu1 %921 }
 0x3ef   : > { %1667 = vrcp.f32 %v922_v8 }
 0x3f2   : > { %v919_v58 = vpop.xlane.xlu1 %918 }
 0x3f3   : > { %1669 = vrcp.f32 %v919_v58 }
 0x3f4   : > { %v1664_v10 = vpop.eup %1663 }
 0x3f5   : > { %v976_v11 = vmul.f32 %v1664_v10, %v2357_v61  ;;  %v975_v12 = vmul.f32 %v1664_v10, %v2355_v5  ;;  %v1016_v10 = vld [vmem:[%s2475_s14 + $0x38] sm:$0xff] }
 0x3f6   : > { %v916_v13 = vpop.xlane.xlu1 %915 }
 0x3f7   : > { %1671 = vrcp.f32 %v916_v13  ;;  %1008 = vst [vmem:[%s2482_s7 + $0xf8] sm:$0xff] %v976_v11  ;;  %1025 = vmatprep.subr.mxu0 %v976_v11  ;;  %1438 = vmatprep.subr.mxu1 %v976_v11  ;;  %1007 = vst [vmem:[%s2482_s7 + $0xf0] sm:$0xff] %v975_v12  ;;  %v1012_v11 = vld [vmem:[%s2475_s14 + $0x18] sm:$0xff]  ;;  %v1017_v13 = vld [vmem:[%s2475_s14 + $0x40] sm:$0xff] }
 0x3f8   : > { %v1666_v14 = vpop.eup %1665  ;;  %1026 = vmatpush1.xpose.msra.mxu0 %v975_v12  ;;  %1454 = vmatpush1.xpose.msra.mxu1 %v975_v12  ;;  %v1018_v12 = vld [vmem:[%s2475_s14 + $0x48] sm:$0xff] }
 0x3f9   : > { %v974_v61 = vmul.f32 %v1666_v14, %v2365_v57  ;;  %v973_v5 = vmul.f32 %v1666_v14, %v2363_v9  ;;  %v1020_v14 = vld [vmem:[%s2475_s14 + $0x58] sm:$0xff] }
 0x3fa   : > { %v913_v15 = vpop.xlane.xlu1 %912 }
 0x3fb   : > { %1673 = vrcp.f32 %v913_v15  ;;  %1006 = vst [vmem:[%s2482_s7 + $0xe8] sm:$0xff] %v974_v61  ;;  %1027 = vmatprep.subr.mxu0 %v974_v61  ;;  %1439 = vmatprep.subr.mxu1 %v974_v61  ;;  %1005 = vst [vmem:[%s2482_s7 + $0xe0] sm:$0xff] %v973_v5  ;;  %v1019_v61 = vld [vmem:[%s2475_s14 + $0x50] sm:$0xff]  ;;  %v1021_v15 = vld [vmem:[%s2475_s14 + $0x60] sm:$0xff] }
 0x3fc   : > { %v1668_v16 = vpop.eup %1667  ;;  %1028 = vmatpush1.xpose.msra.mxu0 %v973_v5  ;;  %1455 = vmatpush1.xpose.msra.mxu1 %v973_v5  ;;  %v1022_v5 = vld [vmem:[%s2475_s14 + $0x68] sm:$0xff] }
 0x3fd   : > { %v972_v18 = vmul.f32 %v1668_v16, %v2373_v56  ;;  %v971_v19 = vmul.f32 %v1668_v16, %v2371_v55  ;;  %v1024_v16 = vld [vmem:[%s2475_s14 + $0x78] sm:$0xff] }
 0x3fe   : > { %v910_v20 = vpop.xlane.xlu1 %909 }
 0x3ff   : > { %1675 = vrcp.f32 %v910_v20  ;;  %1004 = vst [vmem:[%s2482_s7 + $0xd8] sm:$0xff] %v972_v18  ;;  %1029 = vmatprep.subr.mxu0 %v972_v18  ;;  %1440 = vmatprep.subr.mxu1 %v972_v18  ;;  %1003 = vst [vmem:[%s2482_s7 + $0xd0] sm:$0xff] %v971_v19  ;;  %v1023_v18 = vld [vmem:[%s2475_s14 + $0x70] sm:$0xff] }
 0x400   : > { %v1670_v9 = vpop.eup %1669  ;;  %1030 = vmatpush1.xpose.msra.mxu0 %v971_v19  ;;  %1456 = vmatpush1.xpose.msra.mxu1 %v971_v19 }
 0x401   : > { %v970_v57 = vmul.f32 %v1670_v9, %v2381_v54  ;;  %v969_v38 = vmul.f32 %v1670_v9, %v2379_v21 }
 0x402   : > { %v907_v39 = vpop.xlane.xlu1 %906 }
 0x403   : > { %1677 = vrcp.f32 %v907_v39  ;;  %1002 = vst [vmem:[%s2482_s7 + $0xc8] sm:$0xff] %v970_v57  ;;  %1031 = vmatprep.subr.mxu0 %v970_v57  ;;  %1441 = vmatprep.subr.mxu1 %v970_v57  ;;  %1001 = vst [vmem:[%s2482_s7 + $0xc0] sm:$0xff] %v969_v38 }
 0x404   : > { %v1672_v55 = vpop.eup %1671  ;;  %1032 = vmatpush1.xpose.msra.mxu0 %v969_v38  ;;  %1457 = vmatpush1.xpose.msra.mxu1 %v969_v38 }
 0x405   : > { %v968_v56 = vmul.f32 %v1672_v55, %v2391_v29  ;;  %v967_v22 = vmul.f32 %v1672_v55, %v2389_v28 }
 0x406   : > { %v904_v24 = vpop.xlane.xlu1 %903 }
 0x407   : > { %1679 = vrcp.f32 %v904_v24  ;;  %1000 = vst [vmem:[%s2482_s7 + $0xb8] sm:$0xff] %v968_v56  ;;  %1033 = vmatprep.subr.mxu0 %v968_v56  ;;  %1442 = vmatprep.subr.mxu1 %v968_v56  ;;  %999 = vst [vmem:[%s2482_s7 + $0xb0] sm:$0xff] %v967_v22 }
 0x408   : > { %v1674_v21 = vpop.eup %1673  ;;  %1034 = vmatpush1.xpose.msra.mxu0 %v967_v22  ;;  %1458 = vmatpush1.xpose.msra.mxu1 %v967_v22 }
 0x409   : > { %v966_v54 = vmul.f32 %v1674_v21, %v2399_v1  ;;  %v965_v25 = vmul.f32 %v1674_v21, %v2397_v50 }
 0x40a   : > { %v901_v26 = vpop.xlane.xlu1 %900 }
 0x40b   : > { %1681 = vrcp.f32 %v901_v26  ;;  %998 = vst [vmem:[%s2482_s7 + $0xa8] sm:$0xff] %v966_v54  ;;  %1035 = vmatprep.subr.mxu0 %v966_v54  ;;  %1443 = vmatprep.subr.mxu1 %v966_v54  ;;  %997 = vst [vmem:[%s2482_s7 + $0xa0] sm:$0xff] %v965_v25 }
 0x40c   : > { %v1676_v28 = vpop.eup %1675  ;;  %1036 = vmatpush1.xpose.msra.mxu0 %v965_v25  ;;  %1459 = vmatpush1.xpose.msra.mxu1 %v965_v25 }
 0x40d   : > { %v964_v29 = vmul.f32 %v1676_v28, %v2407_v45  ;;  %v963_v51 = vmul.f32 %v1676_v28, %v2405_v62 }
 0x40e   : > { %v898_v52 = vpop.xlane.xlu1 %897 }
 0x40f   : > { %1683 = vrcp.f32 %v898_v52  ;;  %996 = vst [vmem:[%s2482_s7 + $0x98] sm:$0xff] %v964_v29  ;;  %1037 = vmatprep.subr.mxu0 %v964_v29  ;;  %1444 = vmatprep.subr.mxu1 %v964_v29  ;;  %995 = vst [vmem:[%s2482_s7 + $0x90] sm:$0xff] %v963_v51 }
 0x410   : > { %v1678_v50 = vpop.eup %1677  ;;  %1038 = vmatpush1.xpose.msra.mxu0 %v963_v51  ;;  %1460 = vmatpush1.xpose.msra.mxu1 %v963_v51 }
 0x411   : > { %v962_v1 = vmul.f32 %v1678_v50, %v2415_v43  ;;  %v961_v36 = vmul.f32 %v1678_v50, %v2413_v42 }
 0x412   : > { %v895_v46 = vpop.xlane.xlu1 %894 }
 0x413   : > { %1685 = vrcp.f32 %v895_v46  ;;  %994 = vst [vmem:[%s2482_s7 + $0x88] sm:$0xff] %v962_v1  ;;  %1039 = vmatprep.subr.mxu0 %v962_v1  ;;  %1445 = vmatprep.subr.mxu1 %v962_v1  ;;  %993 = vst [vmem:[%s2482_s7 + $0x80] sm:$0xff] %v961_v36 }
 0x414   : > { %v1680_v62 = vpop.eup %1679  ;;  %1040 = vmatpush1.xpose.msra.mxu0 %v961_v36  ;;  %1461 = vmatpush1.xpose.msra.mxu1 %v961_v36 }
 0x415   : > { %v960_v45 = vmul.f32 %v1680_v62, %v2423_v41  ;;  %v959_v30 = vmul.f32 %v1680_v62, %v2421_v40 }
 0x416   : > { %v892_v34 = vpop.xlane.xlu1 %891 }
 0x417   : > { %1687 = vrcp.f32 %v892_v34  ;;  %992 = vst [vmem:[%s2482_s7 + $0x78] sm:$0xff] %v960_v45  ;;  %1041 = vmatprep.subr.mxu0 %v960_v45  ;;  %1446 = vmatprep.subr.mxu1 %v960_v45  ;;  %991 = vst [vmem:[%s2482_s7 + $0x70] sm:$0xff] %v959_v30 }
 0x418   : > { %v1682_v42 = vpop.eup %1681  ;;  %1042 = vmatpush1.xpose.msra.mxu0 %v959_v30  ;;  %1462 = vmatpush1.xpose.msra.mxu1 %v959_v30 }
 0x419   : > { %v958_v43 = vmul.f32 %v1682_v42, %v2429_v53  ;;  %v957_v33 = vmul.f32 %v1682_v42, %v2425_v17 }
 0x41a   : > { %v889_v2 = vpop.xlane.xlu1 %888 }
 0x41b   : > { %1689 = vrcp.f32 %v889_v2  ;;  %990 = vst [vmem:[%s2482_s7 + $0x68] sm:$0xff] %v958_v43  ;;  %1043 = vmatprep.subr.mxu0 %v958_v43  ;;  %1447 = vmatprep.subr.mxu1 %v958_v43  ;;  %989 = vst [vmem:[%s2482_s7 + $0x60] sm:$0xff] %v957_v33 }
 0x41c   : > { %v1684_v40 = vpop.eup %1683  ;;  %1044 = vmatpush1.xpose.msra.mxu0 %v957_v33  ;;  %1463 = vmatpush1.xpose.msra.mxu1 %v957_v33 }
 0x41d   : > { %v956_v41 = vmul.f32 %v1684_v40, %v2437_v27  ;;  %v955_v63 = vmul.f32 %v1684_v40, %v2433_v23 }
 0x41e   : > { %v886_v44 = vpop.xlane.xlu1 %885 }
 0x41f   : > { %1691 = vrcp.f32 %v886_v44  ;;  %988 = vst [vmem:[%s2482_s7 + $0x58] sm:$0xff] %v956_v41  ;;  %1045 = vmatprep.subr.mxu0 %v956_v41  ;;  %1448 = vmatprep.subr.mxu1 %v956_v41  ;;  %987 = vst [vmem:[%s2482_s7 + $0x50] sm:$0xff] %v955_v63 }
 0x420   : > { %v1686_v17 = vpop.eup %1685  ;;  %1046 = vmatpush1.xpose.msra.mxu0 %v955_v63  ;;  %1464 = vmatpush1.xpose.msra.mxu1 %v955_v63 }
 0x421   : > { %v954_v53 = vmul.f32 %v1686_v17, %v2445_v31  ;;  %v953_v6 = vmul.f32 %v1686_v17, %v2441_v37 }
 0x422   : > { %v883_v7 = vpop.xlane.xlu1 %882 }
 0x423   : > { %1693 = vrcp.f32 %v883_v7  ;;  %986 = vst [vmem:[%s2482_s7 + $0x48] sm:$0xff] %v954_v53  ;;  %1047 = vmatprep.subr.mxu0 %v954_v53  ;;  %1449 = vmatprep.subr.mxu1 %v954_v53  ;;  %985 = vst [vmem:[%s2482_s7 + $0x40] sm:$0xff] %v953_v6 }
 0x424   : > { %v1688_v23 = vpop.eup %1687  ;;  %1048 = vmatpush1.xpose.msra.mxu0 %v953_v6  ;;  %1465 = vmatpush1.xpose.msra.mxu1 %v953_v6 }
 0x425   : > { %v952_v27 = vmul.f32 %v1688_v23, %v2451_v35  ;;  %v951_v59 = vmul.f32 %v1688_v23, %v2447_v32 }
 0x427   : > { %984 = vst [vmem:[%s2482_s7 + $0x38] sm:$0xff] %v952_v27  ;;  %1049 = vmatprep.subr.mxu0 %v952_v27  ;;  %1450 = vmatprep.subr.mxu1 %v952_v27  ;;  %983 = vst [vmem:[%s2482_s7 + $0x30] sm:$0xff] %v951_v59 }
 0x428   : > { %v1690_v37 = vpop.eup %1689  ;;  %1050 = vmatpush1.xpose.msra.mxu0 %v951_v59  ;;  %1466 = vmatpush1.xpose.msra.mxu1 %v951_v59 }
 0x429   : > { %v950_v31 = vmul.f32 %v1690_v37, %v2457_v48  ;;  %v949_v60 = vmul.f32 %v1690_v37, %v2453_v47 }
 0x42b   : > { %982 = vst [vmem:[%s2482_s7 + $0x28] sm:$0xff] %v950_v31  ;;  %1051 = vmatprep.subr.mxu0 %v950_v31  ;;  %1451 = vmatprep.subr.mxu1 %v950_v31  ;;  %981 = vst [vmem:[%s2482_s7 + $0x20] sm:$0xff] %v949_v60 }
 0x42c   : > { %v1692_v35 = vpop.eup %1691  ;;  %1052 = vmatpush1.xpose.msra.mxu0 %v949_v60  ;;  %1467 = vmatpush1.xpose.msra.mxu1 %v949_v60 }
 0x42d   : > { %v948_v32 = vmul.f32 %v1692_v35, %v2463_v3  ;;  %v947_v8 = vmul.f32 %v1692_v35, %v2459_v49  ;;  %v1013_v49 = vld [vmem:[%s2475_s14 + $0x20] sm:$0xff] }
 0x42e   : > { %v1009_v3 = vld [vmem:[%s2475_s14] sm:$0xff] }
 0x42f   : > { %980 = vst [vmem:[%s2482_s7 + $0x18] sm:$0xff] %v948_v32  ;;  %1053 = vmatprep.subr.mxu0 %v948_v32  ;;  %1452 = vmatprep.subr.mxu1 %v948_v32  ;;  %979 = vst [vmem:[%s2482_s7 + $0x10] sm:$0xff] %v947_v8 }
 0x430   : > { %v1694_v47 = vpop.eup %1693  ;;  %1054 = vmatpush1.xpose.msra.mxu0 %v947_v8  ;;  %1468 = vmatpush1.xpose.msra.mxu1 %v947_v8 }
 0x431   : > { %v946_v48 = vmul.f32 %v1694_v47, %v2469_v0  ;;  %v945_v58 = vmul.f32 %v1694_v47, %v2465_v4  ;;  %v1015_v4 = vld [vmem:[%s2475_s14 + $0x30] sm:$0xff] }
 0x432   : > { %v1011_v0 = vld [vmem:[%s2475_s14 + $0x10] sm:$0xff]  ;;  %s1793_s14 = scalar_lea.vmem %s1792_s22, 8192 }
 0x433   : > { %978 = vst [vmem:[%s2482_s7 + $0x8] sm:$0xff] %v946_v48  ;;  %1055 = vmatprep.subr.mxu0 %v946_v48  ;;  %1453 = vmatprep.subr.mxu1 %v946_v48  ;;  %977 = vst [vmem:[%s2482_s7] sm:$0xff] %v945_v58  ;;  %p1795_p3 = scmp.lt.s32.totalorder %s1793_s14, %s1787_s21 }
 0x434   : > { %1056 = vmatpush1.xpose.msra.mxu0 %v945_v58  ;;  %1469 = vmatpush1.xpose.msra.mxu1 %v945_v58 }
 0x435   : > { %p1796_p12 = por %p1795_p3, %p1794_p11 }
 0x437   : > { %1100 = vmatmul.mubr.f32.vlgmr.msra.gmra.mxu1 %v1013_v49  ;;  %1090 = vmatmul.mubr.f32.vlgmr.msra.gmra.mxu0 %v1009_v3  ;;  %p1797_p0 = pnand %p1796_p12, %p1790_p9 }
 0x438   : > { %1104 = vmatprep.mubr.f32.mxu1 %v1016_v10  ;;  %1094 = vmatprep.mubr.f32.mxu0 %v1012_v11 }
 0x43b   : > { %1105 = vmatmul.mubr.f32.gmra.mxu1 %v1015_v4  ;;  %1095 = vmatmul.mubr.f32.gmra.mxu0 %v1011_v0 }
 0x43c   : > { %1109 = vmatprep.mubr.f32.mxu1 %v1018_v12 }
 0x43f   : > { %1110 = vmatmul.mubr.f32.gmra.mxu1 %v1017_v13 }
 0x440   : > { %1114 = vmatprep.mubr.f32.mxu1 %v1020_v14 }
 0x443   : > { %1115 = vmatmul.mubr.f32.gmra.mxu1 %v1019_v61 }
 0x444   : > { %1119 = vmatprep.mubr.f32.mxu1 %v1022_v5 }
 0x447   : > { %1120 = vmatmul.mubr.f32.gmra.mxu1 %v1021_v15 }
 0x448   : > { %1124 = vmatprep.mubr.f32.mxu1 %v1024_v16 }
 0x44b   : > { %1125 = vmatmul.mubr.f32.gmra.mxu1 %v1023_v18 }
 0x44c   : > { %1800 = shalt.err (!%p1797_p0)
}
 0x44d   : > { %s1801_s9 = scalar_lea.hbm %s2566_s6, 4096  ;;  %s1805_s25 = scalar_lea.hbm %s2743_s23, 16384 }
 0x44e   : > { %p1802_p4 = scmp.ne.s32.totalorder %s2566_s6, %s1801_s9  ;;  %p1806_p6 = scmp.lt.s32.totalorder %s2566_s6, %s2743_s23 }
 0x44f   : > { %p1807_p10 = scmp.lt.s32.totalorder %s1805_s25, %s1801_s9 }
 0x450   : > { %p1803_p2 = pnand %p1802_p4, %p2124_p5 }
 0x451   : > { %p1808_p13 = por %p1807_p10, %p1806_p6 }
 0x452   : > { %p1804_p8 = pneg %p1803_p2 }
 0x454   : > { %p1809_p1 = pnand %p1808_p13, %p1804_p8 }
 0x456   : > { %1812 = shalt.err (!%p1809_p1)
}
 0x457   : > { %s1954_s18 = smov 256   ;;  %s1955_s17 = smov 16   ;;  %v1695_v56 = vld [vmem:[%s2205_s24 + $0x10] sm:$0xff]  ;;  %v1696_v24 = vld [vmem:[%s2205_s24] sm:$0xff]  ;;  %v1697_v52 = vld [vmem:[%s2205_s24 + $0x18] sm:$0xff] }
 0x458   : > { %1477 = dma.vmem_to_hbm [thread:$0]  (%p2124_p5), %s2568_s29, 4096, %s2566_s6, %s1162_s13, %s1954_s18, %s1954_s18, %s1955_s17  }
 0x459   : > { %s1130_s28 = sld [smem:[#allocation2]]  ;;  %s2599_s21 = scalar_lea.vmem [#allocation9], %s1375_s26  ;;  %v1698_v1 = vld [vmem:[%s2205_s24 + $0x8] sm:$0xff]  ;;  %v1699_v30 = vld [vmem:[%s2205_s24 + $0x20] sm:$0xff]  ;;  %v1701_v17 = vld [vmem:[%s2205_s24 + $0x30] sm:$0xff] }
 0x45a   : > { %s1399_s26 = sshll.u32 %s2740_s5, 4  ;;  %v1700_v2 = vld [vmem:[%s2205_s24 + $0x28] sm:$0xff]  ;;  %s1176_s6 = sshll.u32 %s2599_s21, 4  ;;  %v1702_v27 = vld [vmem:[%s2205_s24 + $0x38] sm:$0xff]  ;;  %s2615_s6 = int_to_ptr.vmem [resolvable:$true] %s1176_s6 }
 0x45b   : > { %s1173_s29 = sadd.s32 %s2739_s8, %s1399_s26  ;;  %s2744_s1 = sld [smem:[#allocation29_spill]] }
 0x45c   : > { %s1400_s13 = sshll.u32 %s1173_s29, 7  ;;  %s1157_s14 = scalar_lea.sflag [#allocation5], %s2199_s16 }
 0x45d   : > { %s1813_s9 = scalar_lea.vmem %s2615_s6, 1024  ;;  %s1956_s7 = smov [#allocation9]  }
 0x45e   : > { %p1814_p9 = scmp.ne.s32.totalorder %s2615_s6, %s1813_s9  ;;  %s1817_s15 = sshll.u32 %s1956_s7, 4  ;;  %s1818_s15 = int_to_ptr.vmem [resolvable:$false] %s1817_s15 }
 0x45f   : > { %v1131_v19 = vstv %s1130_s28  ;;  %s1819_s25 = scalar_lea.vmem %s1818_s15, 2048  ;;  %p1820_p12 = scmp.lt.s32.totalorder %s2615_s6, %s1818_s15 }
 0x460   : > { %p1815_p11 = pnand %p1814_p9, %p2124_p5  ;;  %p1821_p0 = scmp.lt.s32.totalorder %s1819_s25, %s1813_s9 }
 0x461   : > { %s2621_s22 = scalar_lea.hbm %s2744_s1, %s1400_s13 }
 0x462   : > { %p1816_p3 = pneg %p1815_p11  ;;  %p1822_p4 = por %p1821_p0, %p1820_p12 }
 0x464   : > { %p1823_p2 = pnand %p1822_p4, %p1816_p3 }
 0x4f7   : > { %v1101_v20 = vpop.f32.mrf.mxu1  ;;  %v1091_v9 = vpop.f32.mrf.mxu0 }
 0x4f8   : > { %v1134_v57 = vmul.f32 %v1131_v19, %v1101_v20  ;;  %v1132_v38 = vmul.f32 %v1131_v19, %v1091_v9 }
 0x4f9   : > { %v1103_v39 = vpop.f32.mrf.mxu1  ;;  %v1093_v55 = vpop.f32.mrf.mxu0 }
 0x4fa   : > { %v1142_v22 = vadd.f32 %v1695_v56, %v1134_v57  ;;  %v1140_v21 = vadd.f32 %v1696_v24, %v1132_v38 }
 0x4fb   : > { %v1106_v54 = vpop.f32.mrf.mxu1  ;;  %v1096_v25 = vpop.f32.mrf.mxu0 }
 0x4fc   : > { %1150 = vst [vmem:[%s2599_s21 + $0x10] sm:$0xff] %v1142_v22  ;;  %v1135_v26 = vmul.f32 %v1131_v19, %v1106_v54  ;;  %1148 = vst [vmem:[%s2599_s21] sm:$0xff] %v1140_v21  ;;  %v1133_v28 = vmul.f32 %v1131_v19, %v1096_v25 }
 0x4fd   : > { %v1108_v29 = vpop.f32.mrf.mxu1  ;;  %v1098_v51 = vpop.f32.mrf.mxu0 }
 0x4fe   : > { %v1143_v50 = vadd.f32 %v1697_v52, %v1135_v26  ;;  %v1141_v36 = vadd.f32 %v1698_v1, %v1133_v28 }
 0x4ff   : > { %v1111_v46 = vpop.f32.mrf.mxu1 }
 0x500   : > { %1151 = vst [vmem:[%s2599_s21 + $0x18] sm:$0xff] %v1143_v50  ;;  %v1136_v62 = vmul.f32 %v1131_v19, %v1111_v46  ;;  %1149 = vst [vmem:[%s2599_s21 + $0x8] sm:$0xff] %v1141_v36 }
 0x501   : > { %v1113_v45 = vpop.f32.mrf.mxu1 }
 0x502   : > { %v1144_v34 = vadd.f32 %v1699_v30, %v1136_v62 }
 0x503   : > { %v1116_v42 = vpop.f32.mrf.mxu1 }
 0x504   : > { %1152 = vst [vmem:[%s2599_s21 + $0x20] sm:$0xff] %v1144_v34  ;;  %v1137_v43 = vmul.f32 %v1131_v19, %v1116_v42 }
 0x505   : > { %v1118_v33 = vpop.f32.mrf.mxu1 }
 0x506   : > { %v1145_v40 = vadd.f32 %v1700_v2, %v1137_v43 }
 0x507   : > { %v1121_v41 = vpop.f32.mrf.mxu1 }
 0x508   : > { %1153 = vst [vmem:[%s2599_s21 + $0x28] sm:$0xff] %v1145_v40  ;;  %v1138_v63 = vmul.f32 %v1131_v19, %v1121_v41 }
 0x509   : > { %v1123_v44 = vpop.f32.mrf.mxu1 }
 0x50a   : > { %v1146_v53 = vadd.f32 %v1701_v17, %v1138_v63 }
 0x50b   : > { %v1126_v6 = vpop.f32.mrf.mxu1 }
 0x50c   : > { %1154 = vst [vmem:[%s2599_s21 + $0x30] sm:$0xff] %v1146_v53  ;;  %v1139_v7 = vmul.f32 %v1131_v19, %v1126_v6 }
 0x50d   : > { %v1128_v23 = vpop.f32.mrf.mxu1 }
 0x50e   : > { %v1147_v59 = vadd.f32 %v1702_v27, %v1139_v7 }
 0x510   : > { %1155 = vst [vmem:[%s2599_s21 + $0x38] sm:$0xff] %v1147_v59 }
 0x511   : > { %1826 = shalt.err (!%p1823_p2)
}
 0x512   : > { %s1827_s24 = scalar_lea.hbm %s2621_s22, 1024  ;;  %s1831_s17 = scalar_lea.hbm %s2744_s1, 4096 }
 0x513   : > { %p1828_p8 = scmp.ne.s32.totalorder %s2621_s22, %s1827_s24  ;;  %p1832_p13 = scmp.lt.s32.totalorder %s2621_s22, %s2744_s1 }
 0x514   : > { %p1833_p1 = scmp.lt.s32.totalorder %s1831_s17, %s1827_s24 }
 0x515   : > { %p1829_p6 = pnand %p1828_p8, %p2124_p5 }
 0x516   : > { %p1834_p9 = por %p1833_p1, %p1832_p13 }
 0x517   : > { %p1830_p10 = pneg %p1829_p6 }
 0x519   : > { %p1835_p11 = pnand %p1834_p9, %p1830_p10 }
 0x51b   : > { %1838 = shalt.err (!%p1835_p11)
}
 0x51c   : > { %s1957_s26 = smov 128   ;;  %s1958_s29 = smov 8  }
 0x51d   : > { %1476 = dma.vmem_to_hbm [thread:$0]  (%p2124_p5), %s2615_s6, 1024, %s2621_s22, %s1157_s14, %s1957_s26, %s1954_s18, %s1958_s29  }
 0x51e PF: > { %s2745_s13 = sld [smem:[#allocation21_spill]] }
 0x51f   : > { %s2746_s8 = sld [smem:[#allocation17_spill]] }
 0x524   : > { %p1498_p3 = scmp.ge.s32.totalorder %s2745_s13, 2 }
 0x525   : > { %s1210_s9 = sand.u32 1, %s2746_s8  }
 0x526   : > { %p1491_p12 = pnand %p1498_p3, %p2132_p7  ;;  %s1211_s7 = scalar_lea.sflag [#allocation5], %s1210_s9 }
 0x528   : > { %p1492_p0 = pneg %p1491_p12 }
 0x52a   : > { %1892 = dma.done.wait (%p1492_p0), %s1211_s7, 1024  }
 0x52b   : > { %1894 = vsyncadd (%p1492_p0), %s1211_s7, 4294966272  ;;  %s1220_s15 = scalar_lea.sflag [#allocation11], %s1210_s9 }
 0x52c   : > { %1896 = dma.done.wait (%p1492_p0), %s1220_s15, 4096  }
 0x52d   : > { %1898 = vsyncadd (%p1492_p0), %s1220_s15, 4294963200  ;;  %s31_s12 = sadd.s32 1, %s2745_s13   ;;  %s2748_s16 = sld [smem:[#allocation16_spill]] }
 0x52e   : > { %p28_p4 = scmp.ge.s32.totalorder %s31_s12, 6   ;;  %s2749_s28 = sld [smem:[#allocation24_spill]] }
 0x52f   : > { %s2750_s18 = sld [smem:[#allocation18_spill]]  ;;  %s2754_s26 = smov %s1905_s27 }
 0x530   : > { %s2751_s8 = sld [smem:[#allocation25_spill]]  ;;  %s2756_s29 = smov %s1917_s30 }
 0x531   : > { %s2752_s6 = sld [smem:[#allocation22_spill]]  ;;  %s2758_s5 = smov %s1933_s10 }
 0x532   : > { %s2753_s22 = sld [smem:[#allocation23_spill]]  ;;  %s2759_s9 = smov %s1937_s11 }
 0x533   : > { %s2755_s27 = smov %s2748_s16 }
 0x534   :  { %30 = sbr.rel (!%p28_p4) target bundleno = 18 (0x12), region = 130 }
 0x535   : > { %s2757_s30 = smov %s2750_s18 }
 0x537   : > { %s2760_s10 = smov %s2752_s6 }
 0x538   : > { %s2761_s11 = smov %s2753_s22 }
 0x539   :  { %1225 = vsyncpa [#allocation4], 1 }
 0x53a   :  { %1227 = vsyncpa [#allocation4 + $0x1], 1 }
 0x53b   :  { %1228 = vsyncpa [#allocation7], 1 }
 0x53c   :  { %1230 = vsyncpa [#allocation7 + $0x1], 1 }
 0x53d   :  { %1231 = vsyncpa [#allocation5], 1 }
 0x53e   :  { %1233 = vsyncpa [#allocation5 + $0x1], 1 }
 0x53f   :  { %1234 = vsyncpa [#allocation11], 1 }
 0x540   :  { %1236 = vsyncpa [#allocation11 + $0x1], 1 }

</bundles_post_ra>
